<compile_context>
chip_gen: v6e
topology: v6e:2x2x1
jax: 0.10.0
libtpu: 0.0.40
codegen_flags: <defaults>
</compile_context>

<pallas_src>
import functools

import jax
import jax.numpy as jnp
from jax.experimental import pallas as pl
from jax.experimental.pallas import tpu as pltpu


def _round_up(x, m):
    return (x + m - 1) // m * m


# ---------------------------------------------------------------------------
# Kernel 1: one GCN propagation step for one node partition.
#   out = relu((adj @ cur) @ W^T) [+ prev]
# grid = (row_tiles, k_tiles); f32 accumulator lives in VMEM scratch.
# ---------------------------------------------------------------------------
def _gcn_layer_kernel(adj_ref, cur_ref, prev_ref, w_ref, out_ref, acc_ref, *,
                      add_residual):
    k = pl.program_id(1)

    @pl.when(k == 0)
    def _():
        acc_ref[...] = jnp.zeros_like(acc_ref)

    # Dominant matmul: bf16 x bf16 -> f32 accumulate on the MXU.
    acc_ref[...] += jnp.dot(
        adj_ref[...],
        cur_ref[...].astype(jnp.bfloat16),
        preferred_element_type=jnp.float32,
    )

    @pl.when(k == pl.num_programs(1) - 1)
    def _():
        h = jnp.dot(acc_ref[...], w_ref[...], preferred_element_type=jnp.float32)
        h = jnp.maximum(h, 0.0)            # ReLU; dropout = identity at inference
        if add_residual:
            h = h + prev_ref[...]
        out_ref[...] = h


def _gcn_propagate(adj_bf16, cur, prev, w_t, *, add_residual, tm, tk):
    m, k_dim = adj_bf16.shape
    dp = cur.shape[1]
    grid = (m // tm, k_dim // tk)
    kernel = functools.partial(_gcn_layer_kernel, add_residual=add_residual)
    return pl.pallas_call(
        kernel,
        out_shape=jax.ShapeDtypeStruct((m, dp), jnp.float32),
        grid_spec=pltpu.PrefetchScalarGridSpec(
            num_scalar_prefetch=0,
            grid=grid,
            in_specs=[
                pl.BlockSpec((tm, tk), lambda r, k: (r, k)),   # adjacency tile (bf16)
                pl.BlockSpec((tk, dp), lambda r, k: (k, 0)),   # cur activations (K side)
                pl.BlockSpec((tm, dp), lambda r, k: (r, 0)),   # prev activations (rows)
                pl.BlockSpec((dp, dp), lambda r, k: (0, 0)),   # W^T, VMEM-resident
            ],
            out_specs=pl.BlockSpec((tm, dp), lambda r, k: (r, 0)),
            scratch_shapes=[pltpu.VMEM((tm, dp), jnp.float32)],
        ),
        compiler_params=pltpu.CompilerParams(
            dimension_semantics=("parallel", "arbitrary"),
        ),
    )(adj_bf16, cur, prev, w_t)


# ---------------------------------------------------------------------------
# Kernel 2: combine layer without the concat:
#   out = bc + sum_j emb_j @ Wc_j^T
# ---------------------------------------------------------------------------
def _make_combine_kernel(n_emb):
    def kernel(*refs):
        emb_refs = refs[:n_emb]
        wc_ref = refs[n_emb]        # (n_emb, Dp, Dp), VMEM-resident
        b_ref = refs[n_emb + 1]     # (1, Dp),        VMEM-resident
        out_ref = refs[n_emb + 2]
        acc = jnp.broadcast_to(b_ref[...], out_ref.shape).astype(jnp.float32)
        for j in range(n_emb):
            acc = acc + jnp.dot(emb_refs[j][...], wc_ref[j],
                                preferred_element_type=jnp.float32)
        out_ref[...] = acc
    return kernel


def _combine(embs, wc_slabs, bias, *, tm):
    n_emb = len(embs)
    m, dp = embs[0].shape
    in_specs = ([pl.BlockSpec((tm, dp), lambda r: (r, 0)) for _ in range(n_emb)] +
                [pl.BlockSpec(wc_slabs.shape, lambda r: (0, 0, 0)),
                 pl.BlockSpec(bias.shape, lambda r: (0, 0))])
    return pl.pallas_call(
        _make_combine_kernel(n_emb),
        out_shape=jax.ShapeDtypeStruct((m, dp), jnp.float32),
        grid_spec=pltpu.PrefetchScalarGridSpec(
            num_scalar_prefetch=0,
            grid=(m // tm,),
            in_specs=in_specs,
            out_specs=pl.BlockSpec((tm, dp), lambda r: (r, 0)),
        ),
        compiler_params=pltpu.CompilerParams(
            dimension_semantics=("parallel",),
        ),
    )(*embs, wc_slabs, bias)


# ---------------------------------------------------------------------------
# Forward wrapper
# ---------------------------------------------------------------------------
def ngcn_forward(r_norm, base_emb, gcn_weights, combine_w, combine_b, *, blk=256):
    """NGCN forward pass.

    r_norm      : (n_users, n_items)  symmetric-normalized interaction block
                  (the only non-zero block of the bipartite adjacency)
    base_emb    : (N, D)              N = n_users + n_items
    gcn_weights : (L, D, D)           PyTorch Linear weights (out, in), no bias
    combine_w   : (D, D*(L+1))        PyTorch Linear weight (out, in)
    combine_b   : (D,)
    returns     : (N, D) final embeddings (f32)
    """
    n_users, n_items = r_norm.shape
    n_total, d = base_emb.shape
    assert n_total == n_users + n_items
    n_layers = gcn_weights.shape[0]

    f32 = jnp.float32
    dp = _round_up(d, 128)                  # lane-dense feature dim
    nu_pad = _round_up(n_users, blk)
    ni_pad = _round_up(n_items, blk)

    # Bipartite adjacency halves: bf16, zero-padded to tile multiples.  R^T is
    # pre-materialized here (outside the kernel) to avoid an in-kernel transpose.
    r_pad = jnp.pad(r_norm.astype(f32),
                    ((0, nu_pad - n_users), (0, ni_pad - n_items)))
    r_bf16 = r_pad.astype(jnp.bfloat16)
    rt_bf16 = r_bf16.T

    # Split + zero-pad base embeddings (zero rows / zero lanes propagate as zeros).
    emb_u0 = jnp.pad(base_emb[:n_users].astype(f32),
                     ((0, nu_pad - n_users), (0, dp - d)))
    emb_i0 = jnp.pad(base_emb[n_users:].astype(f32),
                     ((0, ni_pad - n_items), (0, dp - d)))

    # Pre-transpose Linear weights, pad to lane-dense (Dp, Dp) slabs.
    w_t = jnp.pad(jnp.transpose(gcn_weights, (0, 2, 1)).astype(f32),
                  ((0, 0), (0, dp - d), (0, dp - d)))               # (L, Dp, Dp)
    wc_t = jnp.pad(combine_w.T.astype(f32).reshape(n_layers + 1, d, d),
                   ((0, 0), (0, dp - d), (0, dp - d)))              # (L+1, Dp, Dp)
    bc = jnp.pad(combine_b.astype(f32).reshape(1, d), ((0, 0), (0, dp - d)))

    cur_u, cur_i = emb_u0, emb_i0
    embs_u, embs_i = [emb_u0], [emb_i0]
    for i in range(n_layers):
        add_res = i > 0
        new_u = _gcn_propagate(r_bf16, cur_i, cur_u, w_t[i],
                               add_residual=add_res, tm=blk, tk=blk)
        new_i = _gcn_propagate(rt_bf16, cur_u, cur_i, w_t[i],
                               add_residual=add_res, tm=blk, tk=blk)
        embs_u.append(new_u)
        embs_i.append(new_i)
        cur_u, cur_i = new_u, new_i

    out_u = _combine(embs_u, wc_t, bc, tm=blk)[:n_users, :d]
    out_i = _combine(embs_i, wc_t, bc, tm=blk)[:n_items, :d]
    return jnp.concatenate([out_u, out_i], axis=0)


# ------------------------------ references ----------------------------------
def full_adjacency(r_norm):
    nu, ni = r_norm.shape
    top = jnp.concatenate([jnp.zeros((nu, nu), jnp.float32), r_norm], axis=1)
    bot = jnp.concatenate([r_norm.T, jnp.zeros((ni, ni), jnp.float32)], axis=1)
    return jnp.concatenate([top, bot], axis=0)


def ngcn_forward_ref(adj, base_emb, gcn_weights, combine_w, combine_b, *,
                     bf16_propagation=False):
    """Pure-JAX reference. bf16_propagation mirrors the kernel's MXU input casts."""
    def prop(a, x):
        if bf16_propagation:
            a = a.astype(jnp.bfloat16)
            x = x.astype(jnp.bfloat16)
        return jnp.dot(a, x, preferred_element_type=jnp.float32)

    embeddings = [base_emb]
    cur = base_emb
    for i in range(gcn_weights.shape[0]):
        new = prop(adj, cur)
        new = jnp.dot(new, gcn_weights[i].T, preferred_element_type=jnp.float32)
        new = jnp.maximum(new, 0.0)
        if i > 0:
            new = new + embeddings[-1]
        embeddings.append(new)
        cur = new
    combined = jnp.concatenate(embeddings, axis=1)
    return (jnp.dot(combined, combine_w.T, preferred_element_type=jnp.float32)
            + combine_b[None, :])


# ----------------------------- test harness ---------------------------------
def xavier_normal(key, shape):
    # matches nn.init.xavier_normal_ for 2-D weights: std = sqrt(2/(fan_in+fan_out))
    fan_out, fan_in = shape[0], shape[1]
    std = jnp.sqrt(2.0 / (fan_in + fan_out))
    return std * jax.random.normal(key, shape, dtype=jnp.float32)


def build_normalized_interactions(key, n_users, n_items, density=0.05):
    """Dense equivalent of the module's symmetric-normalized bipartite R block."""
    r = (jax.random.uniform(key, (n_users, n_items)) < density).astype(jnp.float32)
    deg_u = jnp.maximum(r.sum(axis=1), 1e-12)    # user degrees (clamped like the module)
    deg_i = jnp.maximum(r.sum(axis=0), 1e-12)    # item degrees
    return r / jnp.sqrt(deg_u[:, None] * deg_i[None, :])


if __name__ == "__main__":
    n_users, n_items = 384, 384          # exercises row padding (384 -> 512 per half)
    n_total = n_users + n_items
    embed_dim = 64                       # module default (padded to 128 lanes inside)
    n_layers = 3                         # module default

    key = jax.random.PRNGKey(0)
    k_adj, k_emb, k_gcn, k_cw, k_cb = jax.random.split(key, 5)

    r_norm = build_normalized_interactions(k_adj, n_users, n_items)

    base_emb = xavier_normal(k_emb, (n_total, embed_dim))
    gcn_keys = jax.random.split(k_gcn, n_layers)
    gcn_weights = jnp.stack(
        [xavier_normal(gcn_keys[i], (embed_dim, embed_dim)) for i in range(n_layers)],
        axis=0)                                                   # (L, D, D), (out, in)
    combine_w = xavier_normal(k_cw, (embed_dim, embed_dim * (n_layers + 1)))
    bound = 1.0 / jnp.sqrt(jnp.float32(embed_dim * (n_layers + 1)))
    combine_b = jax.random.uniform(k_cb, (embed_dim,), jnp.float32, -bound, bound)

    out = ngcn_forward(r_norm, base_emb, gcn_weights, combine_w, combine_b)
    out = jax.block_until_ready(out)
    assert out.shape == (n_total, embed_dim)

    adj_full = full_adjacency(r_norm)
    ref_match = ngcn_forward_ref(adj_full, base_emb, gcn_weights, combine_w,
                                 combine_b, bf16_propagation=True)
    ref_f32 = ngcn_forward_ref(adj_full, base_emb, gcn_weights, combine_w,
                               combine_b, bf16_propagation=False)

    assert jnp.allclose(out, ref_match, atol=1e-3, rtol=1e-2), \
        "mismatch vs bf16-matched reference"
    assert jnp.allclose(out, ref_f32, atol=2e-2, rtol=2e-2), \
        "mismatch vs f32 reference"
    print("KERNEL_OK")
</pallas_src>

<mosaic_0001>
module attributes {stable_mosaic.version = 11 : i64} {
  func.func @_gcn_layer_kernel(%arg0: i32, %arg1: i32, %arg2: memref<256x256xbf16, #tpu.memory_space<vmem>>, %arg3: memref<256x128xf32, #tpu.memory_space<vmem>>, %arg4: memref<256x128xf32, #tpu.memory_space<vmem>>, %arg5: memref<128x128xf32, #tpu.memory_space<vmem>>, %arg6: memref<256x128xf32, #tpu.memory_space<vmem>>, %arg7: memref<256x128xf32, #tpu.memory_space<vmem>>) attributes {dimension_semantics = [#tpu.dimension_semantics<parallel>, #tpu.dimension_semantics<arbitrary>], iteration_bounds = array<i64: 2, 2>, scalar_prefetch = 0 : i64, scratch_operands = 1 : i64, tpu.core_type = #tpu.core_type<tc>, window_params = [{transform_indices = @transform_0, window_bounds = array<i64: 256, 256>}, {transform_indices = @transform_1, window_bounds = array<i64: 256, 128>}, {transform_indices = @transform_2, window_bounds = array<i64: 256, 128>}, {pipeline_mode = #tpu.pipeline_mode<synchronous>, transform_indices = @transform_3, window_bounds = array<i64: 128, 128>}, {transform_indices = @transform_4, window_bounds = array<i64: 256, 128>}]} {
    %c0_i32 = arith.constant 0 : i32
    %0 = arith.cmpi eq, %arg1, %c0_i32 : i32
    %1 = arith.extui %0 : i1 to i32
    %c0_i32_0 = arith.constant 0 : i32
    %2 = arith.cmpi ne, %1, %c0_i32_0 : i32
    scf.if %2 {
      %cst_9 = arith.constant 0.000000e+00 : f32
      %13 = vector.broadcast %cst_9 : f32 to vector<256x128xf32>
      %c0_10 = arith.constant 0 : index
      %c0_11 = arith.constant 0 : index
      %14 = vector.load %arg7[%c0_10, %c0_11] : memref<256x128xf32, #tpu.memory_space<vmem>>, vector<256x128xf32>
      tpu.vector_store %arg7[%c0_10, %c0_11], %13 {strides = array<i32>} : memref<256x128xf32, #tpu.memory_space<vmem>>, vector<256x128xf32>,
    } else {
    }
    %c0 = arith.constant 0 : index
    %c0_1 = arith.constant 0 : index
    %3 = vector.load %arg7[%c0, %c0_1] : memref<256x128xf32, #tpu.memory_space<vmem>>, vector<256x128xf32>
    %c0_2 = arith.constant 0 : index
    %c0_3 = arith.constant 0 : index
    %4 = vector.load %arg2[%c0_2, %c0_3] : memref<256x256xbf16, #tpu.memory_space<vmem>>, vector<256x256xbf16>
    %c0_4 = arith.constant 0 : index
    %c0_5 = arith.constant 0 : index
    %5 = vector.load %arg3[%c0_4, %c0_5] : memref<256x128xf32, #tpu.memory_space<vmem>>, vector<256x128xf32>
    %6 = arith.truncf %5 : vector<256x128xf32> to vector<256x128xbf16>
    %cst = arith.constant dense<0.000000e+00> : vector<256x128xf32>
    %7 = tpu.matmul %4, %6, %cst {dimension_numbers = #tpu.dot_dimension_numbers<[1], [0], [0], [1], [0, 0, 1, 1], [], []>} : vector<256x256xbf16>, vector<256x128xbf16>, vector<256x128xf32> -> vector<256x128xf32>
    %8 = arith.addf %3, %7 : vector<256x128xf32>
    %c0_6 = arith.constant 0 : index
    %c0_7 = arith.constant 0 : index
    %9 = vector.load %arg7[%c0_6, %c0_7] : memref<256x128xf32, #tpu.memory_space<vmem>>, vector<256x128xf32>
    tpu.vector_store %arg7[%c0_6, %c0_7], %8 {strides = array<i32>} : memref<256x128xf32, #tpu.memory_space<vmem>>, vector<256x128xf32>,
    %c1_i32 = arith.constant 1 : i32
    %10 = arith.cmpi eq, %arg1, %c1_i32 : i32
    %11 = arith.extui %10 : i1 to i32
    %c0_i32_8 = arith.constant 0 : i32
    %12 = arith.cmpi ne, %11, %c0_i32_8 : i32
    scf.if %12 {
      %c0_9 = arith.constant 0 : index
      %c0_10 = arith.constant 0 : index
      %13 = vector.load %arg7[%c0_9, %c0_10] : memref<256x128xf32, #tpu.memory_space<vmem>>, vector<256x128xf32>
      %c0_11 = arith.constant 0 : index
      %c0_12 = arith.constant 0 : index
      %14 = vector.load %arg5[%c0_11, %c0_12] : memref<128x128xf32, #tpu.memory_space<vmem>>, vector<128x128xf32>
      %cst_13 = arith.constant dense<0.000000e+00> : vector<256x128xf32>
      %15 = tpu.matmul %13, %14, %cst_13 {dimension_numbers = #tpu.dot_dimension_numbers<[1], [0], [0], [1], [0, 0, 1, 1], [], []>} : vector<256x128xf32>, vector<128x128xf32>, vector<256x128xf32> -> vector<256x128xf32>
      %cst_14 = arith.constant 0.000000e+00 : f32
      %16 = vector.broadcast %cst_14 : f32 to vector<256x128xf32>
      %17 = arith.maximumf %15, %16 : vector<256x128xf32>
      %c0_15 = arith.constant 0 : index
      %c0_16 = arith.constant 0 : index
      %18 = vector.load %arg6[%c0_15, %c0_16] : memref<256x128xf32, #tpu.memory_space<vmem>>, vector<256x128xf32>
      tpu.vector_store %arg6[%c0_15, %c0_16], %17 {strides = array<i32>} : memref<256x128xf32, #tpu.memory_space<vmem>>, vector<256x128xf32>,
    } else {
    }
    return
  }
  func.func @transform_0(%arg0: i32, %arg1: i32) -> (i32, i32) {
    %c0_i32 = arith.constant 0 : i32
    return %arg0, %arg1 : i32, i32
  }
  func.func @transform_1(%arg0: i32, %arg1: i32) -> (i32, i32) {
    %c0_i32 = arith.constant 0 : i32
    %c0_i32_0 = arith.constant 0 : i32
    return %arg1, %c0_i32 : i32, i32
  }
  func.func @transform_2(%arg0: i32, %arg1: i32) -> (i32, i32) {
    %c0_i32 = arith.constant 0 : i32
    %c0_i32_0 = arith.constant 0 : i32
    return %arg0, %c0_i32 : i32, i32
  }
  func.func @transform_3(%arg0: i32, %arg1: i32) -> (i32, i32) {
    %c0_i32 = arith.constant 0 : i32
    %c0_i32_0 = arith.constant 0 : i32
    %c0_i32_1 = arith.constant 0 : i32
    return %c0_i32, %c0_i32_0 : i32, i32
  }
  func.func @transform_4(%arg0: i32, %arg1: i32) -> (i32, i32) {
    %c0_i32 = arith.constant 0 : i32
    %c0_i32_0 = arith.constant 0 : i32
    return %arg0, %c0_i32 : i32, i32
  }
}

</mosaic_0001>

<bundles_post_ra>
// kernel: tpu_custom_call.1
= control target key start
LH: loop header
LB: loop body
LE: loop exit
PB: predicated region body
PF: predicated region fallthrough
CT: control target
= control target key end

     0   :  { %s2688_s0 = inlined_call_operand.hbm [shape: bf16[512,512], index: 0, kind: input, shape index: {}]   ;;  %s2689_s1 = inlined_call_operand.hbm [shape: f32[512,128], index: 1, kind: input, shape index: {}]   ;;  %s2690_s2 = inlined_call_operand.hbm [shape: f32[512,128], index: 2, kind: input, shape index: {}]   ;;  %s2691_s3 = inlined_call_operand.hbm [shape: f32[128,128], index: 3, kind: input, shape index: {}]   ;;  %s2692_s4 = inlined_call_operand.hbm [shape: f32[512,128], index: 4, kind: output, shape index: {}]  }
   0x1   :  { %2709 = sst [smem:[#allocation26_spill]] %s2688_s0 }
   0x2   :  { %2710 = sst [smem:[#allocation27_spill]] %s2689_s1 }
   0x3   :  { %2711 = sst [smem:[#allocation28_spill]] %s2691_s3 }
   0x4   :  { %2712 = sst [smem:[#allocation29_spill]] %s2692_s4 }
   0x5   :  { %9 = vsyncpa [#allocation4], 0 }
   0x6   :  { %11 = vsyncpa [#allocation4 + $0x1], 0 }
   0x7   :  { %12 = vsyncpa [#allocation7], 0 }
   0x8   :  { %14 = vsyncpa [#allocation7 + $0x1], 0 }
   0x9   :  { %15 = vsyncpa [#allocation10], 0 }
   0xa   :  { %16 = vsyncpa [#allocation5], 0 }
   0xb   :  { %18 = vsyncpa [#allocation5 + $0x1], 0  ;;  %s2216_s15 = smov 0   ;;  %s2218_s16 = smov 0  }
   0xc   :  { %s2220_s17 = smov 0   ;;  %s2222_s18 = smov 0  }
   0xd   :  { %s2224_s19 = smov 0   ;;  %s2226_s20 = smov 0  }
   0xe   :  { %s2228_s21 = smov 0   ;;  %s2230_s22 = smov 0  }
   0xf   :  { %s2232_s23 = smov 0   ;;  %s2234_s24 = smov 0  }
  0x10   :  { %s2236_s25 = smov 0   ;;  %s2238_s26 = smov 0  }
  0x11   :  { %s2240_s27 = smov 0   ;;  %s2242_s28 = smov 0  }
  0x12 LB: > { %2713 = sst [smem:[#allocation17_spill]] %s2146_s20  ;;  %s33_s29 = sadd.s32 1, %s2170_s26  ;;  %s2178_s28 = sphi %s2242_s28, %s24_s28   ;;  %s2174_s27 = sphi %s2240_s27, %s2761_s27   ;;  %s2170_s26 = sphi %s2238_s26, %s2760_s26   ;;  %s2166_s25 = sphi %s2236_s25, %s2759_s25   ;;  %s2162_s24 = sphi %s2234_s24, %s2758_s24   ;;  %s2158_s23 = sphi %s2232_s23, %s2757_s23   ;;  %s2154_s22 = sphi %s2230_s22, %s2768_s22   ;;  %s2150_s21 = sphi %s2228_s21, %s2767_s21   ;;  %s2146_s20 = sphi %s2226_s20, %s2755_s20   ;;  %s2142_s19 = sphi %s2224_s19, %s2766_s19   ;;  %s2138_s18 = sphi %s2222_s18, %s2765_s18   ;;  %s2134_s17 = sphi %s2220_s17, %s2764_s17   ;;  %s2130_s16 = sphi %s2218_s16, %s2763_s16   ;;  %s2126_s15 = sphi %s2216_s15, %s2762_s15  }
  0x13   : > { %2714 = sst [smem:[#allocation18_spill]] %s2158_s23  ;;  %s36_s30 = sadd.s32 1, %s2174_s27 }
  0x14   : > { %2715 = sst [smem:[#allocation19_spill]] %s2166_s25  ;;  %p34_p0 = scmp.ge.s32.totalorder %s33_s29, 2 }
  0x15   : > { %2716 = sst [smem:[#allocation20_spill]] %s2170_s26  ;;  %p2697_p1 = scmp.eq.s32.totalorder %s2178_s28, 0 }
  0x16   : > { %2717 = sst [smem:[#allocation21_spill]] %s2174_s27  ;;  %s71_s5 = sadd.s32 1, %s2146_s20 }
  0x17   : > { %p78_p2 = scmp.ne.s32.totalorder %s2146_s20, %s2142_s19  ;;  %s2770_s29 = smov (%p34_p0, %s33_s29), 0 }
  0x18   : > { %2718 = sst [smem:[#allocation22_spill]] %s2770_s29  ;;  %s2772_s30 = smov (!%p34_p0, %s36_s30), %s2174_s27 }
  0x19   : > { %s41_s6 = ssub.s32 %s2170_s26, %s2770_s29  ;;  %p2299_p3 = por %p78_p2, %p2697_p1 }
  0x1a   : > { %p38_p4 = scmp.ge.s32.totalorder %s2772_s30, 2  ;;  %p69_p5 = scmp.eq.s32.totalorder %s41_s6, 0 }
  0x1b   : > { %p84_p6 = scmp.ne.s32.totalorder %s2142_s19, %s2138_s18  ;;  %p2696_p9 = scmp.lt.s32.totalorder %s2178_s28, 4 }
  0x1c   : > { %s2774_s30 = smov (%p38_p4, %s2772_s30), 0  ;;  %s218_s12 = sand.u32 1, %s2178_s28  }
  0x1d   : > { %2720 = sst [smem:[#allocation23_spill]] %s2774_s30  ;;  %s2312_s9 = ssub.s32 %s2174_s27, %s2774_s30 }
  0x1e   : > { %s2308_s8 = scalar_select %p69_p5, %s2146_s20, %s71_s5  }
  0x1f   : > { %s42_s10 = sor.u32 %s41_s6, %s2312_s9  ;;  %s220_s13 = sand.u32 1, %s2146_s20  }
  0x20   : > { %2721 = sst [smem:[#allocation24_spill]] %s2308_s8  ;;  %p2316_p8 = scmp.eq.s32.totalorder %s42_s10, 0 }
  0x21   : > { %s1369_s14 = sshll.u32 %s220_s13, 8  ;;  %s1420_s29 = sshll.u32 %s2170_s26, 12 }
  0x22   : > { %s2723_s1 = sld [smem:[#allocation27_spill]]  ;;  %s222_s8 = scalar_lea.vmem [#allocation6], %s1369_s14 }
  0x23   : > { %s229_s30 = sshll.u32 %s222_s8, 4  ;;  %p2331_p10 = pnand %p2696_p9, %p2299_p3  ;;  %s230_s30 = int_to_ptr.vmem [resolvable:$true] %s229_s30 }
  0x24   : > { %s2335_s10 = scalar_lea.sflag [#allocation7], %s218_s12  ;;  %s1925_s13 = scalar_lea.vmem %s230_s30, 4096 }
  0x25   : > { %p1914_p11 = pneg %p2331_p10  ;;  %p1926_p12 = scmp.ne.s32.totalorder %s230_s30, %s1925_s13 }
  0x26   : > { %s2180_s4 = smov [#allocation6]  }
  0x27   : > { %p1928_p13 = pnand %p1926_p12, %p1914_p11  ;;  %s1930_s25 = sshll.u32 %s2180_s4, 4  ;;  %s1931_s25 = int_to_ptr.vmem [resolvable:$false] %s1930_s25 }
  0x28   : > { %s228_s5 = scalar_lea.hbm %s2723_s1, %s1420_s29  ;;  %s1932_s29 = scalar_lea.vmem %s1931_s25, 8192 }
  0x29   : > { %p1929_p0 = pneg %p1928_p13  ;;  %p1933_p2 = scmp.lt.s32.totalorder %s230_s30, %s1931_s25 }
  0x2a   : > { %p1934_p4 = scmp.lt.s32.totalorder %s1932_s29, %s1925_s13 }
  0x2c   : > { %p1935_p3 = por %p1934_p4, %p1933_p2 }
  0x2e   : > { %p1936_p5 = pnand %p1935_p3, %p1929_p0 }
  0x30   : > { %1939 = shalt.err (!%p1936_p5)
}
  0x31   : > { %s2699_s7 = smov 128   ;;  %s2701_s8 = smov 8  }
  0x32   : > { %1733 = dma.hbm_to_vmem [thread:$0]  (!%p2331_p10), %s228_s5, 4096, %s230_s30, %s2335_s10, %s2699_s7, %s2699_s7, %s2701_s8  }
  0x33   : > { %s2346_s12 = sadd.s32 4294967295, %s2178_s28   ;;  %p1361_p11 = scmp.ge.s32.totalorder %s2178_s28, 1 }
  0x34   : > { %p2707_p12 = scmp.eq.s32.totalorder %s2346_s12, 0  ;;  %p168_p0 = scmp.lt.s32.totalorder %s2178_s28, 5 }
  0x35   : > { %s2183_s30 = smov [#allocation9]   ;;  %s45_s13 = sadd.s32 1, %s2158_s23 }
  0x36   : > { %p2357_p2 = por %p84_p6, %p2707_p12  ;;  %p2361_p4 = pnand %p1361_p11, %p168_p0 }
  0x37   : > { %s180_s5 = sshll.u32 %s2183_s30, 4  ;;  %p52_p5 = scmp.ne.s32.totalorder %s2158_s23, %s2154_s22  ;;  %s181_s5 = int_to_ptr.vmem [resolvable:$true] %s180_s5 }
  0x38   : > { %s2725_s14 = scalar_select %p2357_p2, 1, 0 }
  0x39   : > { %p1723_p10 = pneg %p2361_p4  ;;  %s1951_s18 = scalar_lea.vmem %s181_s5, 2048 }
  0x3a   : > { %p1952_p6 = scmp.ne.s32.totalorder %s181_s5, %s1951_s18  ;;  %p1959_p1 = scmp.lt.s32.totalorder %s181_s5, %s181_s5 }
  0x3b   : > { %p1724_p3 = pnand %p1723_p10, %p2707_p12  ;;  %p1960_p11 = scmp.lt.s32.totalorder %s1951_s18, %s1951_s18 }
  0x3d   : > { %p1942_p13 = pneg %p1724_p3  ;;  %p1961_p0 = por %p1960_p11, %p1959_p1 }
  0x3f   : > { %p1954_p7 = pnand %p1952_p6, %p1942_p13 }
  0x41   : > { %p1955_p9 = pneg %p1954_p7 }
  0x43   : > { %p1962_p2 = pnand %p1961_p0, %p1955_p9 }
  0x45   : > { %1965 = shalt.err (!%p1962_p2)
}
  0x46   : > { %s2727_s3 = sld [smem:[#allocation28_spill]]  ;;  %p2729_p1 = scmp.eq.s32.totalorder %s2178_s28, 0 }
  0x47   : > { %s2381_s29 = scalar_select %p2316_p8, %s2158_s23, %s45_s13  }
  0x48   : > { %p2388_p7 = por %p2729_p1, %p52_p5  ;;  %p58_p9 = scmp.ne.s32.totalorder %s2154_s22, %s2150_s21 }
  0x49   : > { %2728 = sst [smem:[#allocation25_spill]] %s2381_s29  ;;  %s194_s18 = sand.u32 1, %s2158_s23  }
  0x4a   : > { %s1366_s4 = sshll.u32 %s2170_s26, 1  ;;  %p2398_p13 = por %p2707_p12, %p58_p9 }
  0x4b   : > { %s1364_s1 = sshll.u32 %s194_s18, 8  ;;  %s2732_s0 = sld [smem:[#allocation26_spill]] }
  0x4c   : > { %1726 = dma.hbm_to_vmem [thread:$0]  (!%p1724_p3), %s2727_s3, 2048, %s181_s5, [#allocation10], %s2699_s7, %s2699_s7, %s2701_s8  }
  0x4d   : > { %s1419_s5 = sshll.u32 %s2174_s27, 7  ;;  %s198_s7 = scalar_lea.vmem [#allocation3], %s1364_s1 }
  0x4e   : > { %s205_s11 = sadd.s32 %s1419_s5, %s1366_s4  ;;  %s208_s8 = sshll.u32 %s198_s7, 4  ;;  %s209_s8 = int_to_ptr.vmem [resolvable:$true] %s208_s8 }
  0x4f   : > { %s1368_s13 = sshll.u32 %s205_s11, 6  ;;  %p2733_p8 = scmp.lt.s32.totalorder %s2178_s28, 4 }
  0x50   : > { %s195_s26 = scalar_lea.sflag [#allocation4], %s194_s18  ;;  %s1979_s23 = scalar_lea.vmem %s209_s8, 4096 }
  0x51   : > { %s207_s20 = scalar_lea.hbm %s2732_s0, %s1368_s13  ;;  %p2410_p2 = pnand %p2733_p8, %p2388_p7 }
  0x52   : > { %p1980_p3 = scmp.ne.s32.totalorder %s209_s8, %s1979_s23  ;;  %s2184_s1 = smov [#allocation3]  }
  0x53   : > { %p1968_p10 = pneg %p2410_p2  ;;  %s1984_s7 = sshll.u32 %s2184_s1, 4  ;;  %s1985_s7 = int_to_ptr.vmem [resolvable:$false] %s1984_s7 }
  0x54   : > { %s1986_s3 = scalar_lea.vmem %s1985_s7, 8192  ;;  %p1987_p11 = scmp.lt.s32.totalorder %s209_s8, %s1985_s7 }
  0x55   : > { %p1982_p5 = pnand %p1980_p3, %p1968_p10  ;;  %p1988_p0 = scmp.lt.s32.totalorder %s1986_s3, %s1979_s23 }
  0x57   : > { %p1983_p6 = pneg %p1982_p5  ;;  %p1989_p1 = por %p1988_p0, %p1987_p11 }
  0x59   : > { %p1990_p9 = pnand %p1989_p1, %p1983_p6 }
  0x5b   : > { %1993 = shalt.err (!%p1990_p9)
}
  0x5c   : > { %s2185_s29 = smov 256   ;;  %s2735_s30 = smov 8  }
  0x5d   : > { %s2736_s18 = smov 128   ;;  %s1360_s23 = sadd.s32 4294967294, %s2178_s28  }
  0x5e   : > { %1730 = dma.hbm_to_vmem [thread:$0]  (!%p2410_p2), %s207_s20, 4096, %s209_s8, %s195_s26, %s2185_s29, %s2736_s18, %s2735_s30  }
  0x5f   : > { %s97_s4 = sadd.s32 1, %s2134_s17  ;;  %p104_p7 = scmp.ne.s32.totalorder %s2134_s17, %s2130_s16 }
  0x60   : > { %p2737_p8 = scmp.eq.s32.totalorder %s2312_s9, 0  ;;  %p2738_p10 = scmp.eq.s32.totalorder %s2178_s28, 0 }
  0x61   : > { %p110_p5 = scmp.ne.s32.totalorder %s2130_s16, %s2126_s15  ;;  %p2740_p6 = scmp.eq.s32.totalorder %s2346_s12, 3 }
  0x62   : > { %s2427_s5 = scalar_select %p2737_p8, %s2134_s17, %s97_s4  }
  0x63   : > { %p2431_p3 = por %p104_p7, %p2738_p10  ;;  %p2439_p11 = por %p2740_p6, %p104_p7 }
  0x64   : > { %p161_p2 = scmp.eq.s32.totalorder %s1360_s23, 3  ;;  %p2445_p0 = por %p110_p5, %p2707_p12 }
  0x65   : > { %s2741_s13 = scalar_select %p2439_p11, 1, 0 }
  0x66   : > { %s241_s26 = sand.u32 1, %s2134_s17   ;;  %p2450_p1 = por %p161_p2, %p110_p5 }
  0x67   : > { %s1372_s8 = sshll.u32 %s241_s26, 8  ;;  %s1421_s21 = sshll.u32 %s2174_s27, 12 }
  0x68   : > { %s2743_s9 = scalar_select %p2450_p1, 1, 0 }
  0x69   : > { %s249_s3 = scalar_lea.hbm %s2690_s2, %s1421_s21  ;;  %s243_s29 = scalar_lea.vmem [#allocation8], %s1372_s8 }
  0x6a   : > { %s250_s4 = sshll.u32 %s243_s29, 4  ;;  %p2744_p9 = scmp.lt.s32.totalorder %s2178_s28, 4  ;;  %s251_s4 = int_to_ptr.vmem [resolvable:$true] %s250_s4 }
  0x6b   : > { %s2007_s0 = scalar_lea.vmem %s251_s4, 4096  ;;  %s2186_s26 = smov [#allocation8]  }
  0x6c   : > { %p2462_p7 = pnand %p2744_p9, %p2431_p3  ;;  %p2008_p10 = scmp.ne.s32.totalorder %s251_s4, %s2007_s0 }
  0x6d   : > { %s2012_s27 = sshll.u32 %s2186_s26, 4  ;;  %s2013_s27 = int_to_ptr.vmem [resolvable:$false] %s2012_s27 }
  0x6e   : > { %p1996_p8 = pneg %p2462_p7  ;;  %s2014_s21 = scalar_lea.vmem %s2013_s27, 8192 }
  0x6f   : > { %p2015_p2 = scmp.lt.s32.totalorder %s251_s4, %s2013_s27  ;;  %p2016_p12 = scmp.lt.s32.totalorder %s2014_s21, %s2007_s0 }
  0x70   : > { %p2010_p5 = pnand %p2008_p10, %p1996_p8 }
  0x71   : > { %p2017_p1 = por %p2016_p12, %p2015_p2 }
  0x72   : > { %p2011_p6 = pneg %p2010_p5 }
  0x74   : > { %p2018_p11 = pnand %p2017_p1, %p2011_p6 }
  0x76   : > { %2021 = shalt.err (!%p2018_p11)
}
  0x77   : > { %1736 = dma.hbm_to_vmem [thread:$0]  (!%p2462_p7), %s249_s3, 4096, %s251_s4, %s2335_s10, %s2736_s18, %s2736_s18, %s2735_s30  }
  0x78   : > { %262 = sbr.rel (%p2361_p4) target bundleno = 742 (0x2e6), region = 36  ;;  %s264_s11 = sand.u32 (!%p2361_p4), 1, %s2154_s22  }
  0x79   : > { %s1376_s8 = sshll.u32 (!%p2361_p4), %s264_s11, 8  ;;  %s265_s1 = scalar_lea.sflag (!%p2361_p4), [#allocation4], %s264_s11 }
  0x7a   : > { %s2477_s27 = scalar_lea.vmem (!%p2361_p4), [#allocation3], %s1376_s8 }
  0x7d   : > { %2105 = dma.done.wait (%p2398_p13), %s265_s1, 4096  }
  0x7e   : > { %2107 = vsyncadd (%p2398_p13), %s265_s1, 4294963200  ;;  %s273_s0 = sand.u32 1, %s2346_s12   ;;  %s275_s10 = sand.u32 1, %s2142_s19  }
  0x7f   : > { %s1377_s30 = sshll.u32 %s275_s10, 8  ;;  %s274_s6 = scalar_lea.sflag [#allocation7], %s273_s0 }
  0x80   : > { %s2485_s18 = scalar_lea.vmem [#allocation6], %s1377_s30  ;;  %p2746_p12 = scmp.ne.s32.totalorder %s2725_s14, 0 }
  0x82   : > { %2109 = dma.done.wait (%p2746_p12), %s274_s6, 4096  }
  0x83   : > { %2111 = vsyncadd (%p2746_p12), %s274_s6, 4294963200 }
  0x84   : > { %2113 = dma.done.wait (%p2445_p0), %s274_s6, 4096  }
  0x85   : > { %2115 = vsyncadd (%p2445_p0), %s274_s6, 4294963200  ;;  %p2747_p4 = scmp.eq.s32.totalorder %s2346_s12, 0 }
  0x87   : > { %2117 = dma.done.wait (%p2747_p4), [#allocation10], 2048   ;;  %p2748_p13 = pmov %p2747_p4 }
  0x88   : > { %s322_s25 = sand.u32 1, %s2130_s16   ;;  %p1380_p3 = scmp.ne.s32.totalorder %s2162_s24, 0 }
  0x89   : > { %2119 = vsyncadd (%p2748_p13), [#allocation10], 4294965248  ;;  %s1379_s7 = sshll.u32 %s322_s25, 8 }
  0x8a   : > { %s2502_s3 = scalar_lea.vmem [#allocation11], %s1379_s7  ;;  %334 = sbr.rel (%p1380_p3) target bundleno = 160 (0xa0), region = 56 }
  0x8f   : > { %v2187_v0 = vmov 0.0  }
  0x90   : > { %335 = vst [vmem:[#allocation2 + $0xb0] sm:$0xff] %v2187_v0  ;;  %336 = vst [vmem:[#allocation2] sm:$0xff] %v2187_v0 }
  0x91   : > { %337 = vst [vmem:[#allocation2 + $0xd8] sm:$0xff] %v2187_v0  ;;  %338 = vst [vmem:[#allocation2 + $0x18] sm:$0xff] %v2187_v0 }
  0x92   : > { %339 = vst [vmem:[#allocation2 + $0x50] sm:$0xff] %v2187_v0  ;;  %340 = vst [vmem:[#allocation2 + $0x68] sm:$0xff] %v2187_v0 }
  0x93   : > { %341 = vst [vmem:[#allocation2 + $0x30] sm:$0xff] %v2187_v0  ;;  %342 = vst [vmem:[#allocation2 + $0x48] sm:$0xff] %v2187_v0 }
  0x94   : > { %343 = vst [vmem:[#allocation2 + $0x80] sm:$0xff] %v2187_v0  ;;  %344 = vst [vmem:[#allocation2 + $0x88] sm:$0xff] %v2187_v0 }
  0x95   : > { %345 = vst [vmem:[#allocation2 + $0xe8] sm:$0xff] %v2187_v0  ;;  %346 = vst [vmem:[#allocation2 + $0xb8] sm:$0xff] %v2187_v0 }
  0x96   : > { %347 = vst [vmem:[#allocation2 + $0x60] sm:$0xff] %v2187_v0  ;;  %348 = vst [vmem:[#allocation2 + $0xf0] sm:$0xff] %v2187_v0 }
  0x97   : > { %349 = vst [vmem:[#allocation2 + $0x8] sm:$0xff] %v2187_v0  ;;  %350 = vst [vmem:[#allocation2 + $0x78] sm:$0xff] %v2187_v0 }
  0x98   : > { %351 = vst [vmem:[#allocation2 + $0x38] sm:$0xff] %v2187_v0  ;;  %352 = vst [vmem:[#allocation2 + $0x58] sm:$0xff] %v2187_v0 }
  0x99   : > { %353 = vst [vmem:[#allocation2 + $0x40] sm:$0xff] %v2187_v0  ;;  %354 = vst [vmem:[#allocation2 + $0xc8] sm:$0xff] %v2187_v0 }
  0x9a   : > { %355 = vst [vmem:[#allocation2 + $0xe0] sm:$0xff] %v2187_v0  ;;  %356 = vst [vmem:[#allocation2 + $0x90] sm:$0xff] %v2187_v0 }
  0x9b   : > { %357 = vst [vmem:[#allocation2 + $0x70] sm:$0xff] %v2187_v0  ;;  %358 = vst [vmem:[#allocation2 + $0xc0] sm:$0xff] %v2187_v0 }
  0x9c   : > { %359 = vst [vmem:[#allocation2 + $0xa8] sm:$0xff] %v2187_v0  ;;  %360 = vst [vmem:[#allocation2 + $0xd0] sm:$0xff] %v2187_v0 }
  0x9d   : > { %361 = vst [vmem:[#allocation2 + $0x10] sm:$0xff] %v2187_v0  ;;  %362 = vst [vmem:[#allocation2 + $0x28] sm:$0xff] %v2187_v0 }
  0x9e   : > { %363 = vst [vmem:[#allocation2 + $0xa0] sm:$0xff] %v2187_v0  ;;  %364 = vst [vmem:[#allocation2 + $0xf8] sm:$0xff] %v2187_v0 }
  0x9f   : > { %365 = vst [vmem:[#allocation2 + $0x20] sm:$0xff] %v2187_v0  ;;  %366 = vst [vmem:[#allocation2 + $0x98] sm:$0xff] %v2187_v0 }
  0xa0 PF: > { %v461_v1 = vld [vmem:[%s2485_s18 + $0xf0] sm:$0xff]  ;;  %v462_v2 = vld [vmem:[%s2485_s18 + $0xf8] sm:$0xff]  ;;  %v459_v6 = vld [vmem:[%s2485_s18 + $0xe0] sm:$0xff]  ;;  %p1413_p11 = scmp.ne.s32.totalorder %s2162_s24, 1 }
  0xa1   : > { %v445_v3 = vld [vmem:[%s2485_s18 + $0x70] sm:$0xff]  ;;  %v478_v4 = vpack.c.bf16 %v462_v2, %v461_v1  ;;  %v446_v5 = vld [vmem:[%s2485_s18 + $0x78] sm:$0xff]  ;;  %v460_v7 = vld [vmem:[%s2485_s18 + $0xe8] sm:$0xff] }
  0xa2   : > { %v470_v8 = vpack.c.bf16 %v446_v5, %v445_v3  ;;  %v477_v9 = vpack.c.bf16 %v460_v7, %v459_v6  ;;  %v443_v10 = vld [vmem:[%s2485_s18 + $0x60] sm:$0xff]  ;;  %v444_v11 = vld [vmem:[%s2485_s18 + $0x68] sm:$0xff]  ;;  %v457_v12 = vld [vmem:[%s2485_s18 + $0xd0] sm:$0xff] }
  0xa3   : > { %1423 = vmatprep.subr.bf16.mxu0 %v478_v4  ;;  %1663 = vmatprep.subr.bf16.mxu1 %v478_v4  ;;  %v458_v13 = vld [vmem:[%s2485_s18 + $0xd8] sm:$0xff]  ;;  %v469_v14 = vpack.c.bf16 %v444_v11, %v443_v10  ;;  %v441_v16 = vld [vmem:[%s2485_s18 + $0x50] sm:$0xff]  ;;  %v455_v18 = vld [vmem:[%s2485_s18 + $0xc0] sm:$0xff] }
  0xa4   : > { %1424 = vmatpush3.bf16.msra.mxu0 %v470_v8  ;;  %1671 = vmatpush3.bf16.msra.mxu1 %v470_v8  ;;  %v476_v15 = vpack.c.bf16 %v458_v13, %v457_v12  ;;  %v442_v17 = vld [vmem:[%s2485_s18 + $0x58] sm:$0xff]  ;;  %v456_v19 = vld [vmem:[%s2485_s18 + $0xc8] sm:$0xff]  ;;  %v439_v22 = vld [vmem:[%s2485_s18 + $0x40] sm:$0xff] }
  0xa5   : > { %1425 = vmatprep.subr.bf16.mxu0 %v477_v9  ;;  %1664 = vmatprep.subr.bf16.mxu1 %v477_v9  ;;  %v468_v20 = vpack.c.bf16 %v442_v17, %v441_v16  ;;  %v475_v21 = vpack.c.bf16 %v456_v19, %v455_v18  ;;  %v440_v23 = vld [vmem:[%s2485_s18 + $0x48] sm:$0xff]  ;;  %v453_v24 = vld [vmem:[%s2485_s18 + $0xb0] sm:$0xff]  ;;  %v454_v25 = vld [vmem:[%s2485_s18 + $0xb8] sm:$0xff] }
  0xa6   : > { %v437_v26 = vld [vmem:[%s2485_s18 + $0x30] sm:$0xff]  ;;  %v438_v27 = vld [vmem:[%s2485_s18 + $0x38] sm:$0xff]  ;;  %v1866_v28 = vld [vmem:[%s2477_s27 + $0x4] ss:$8 sps:$4 sm:$0xff]   ;;  %v467_v29 = vpack.c.bf16 %v440_v23, %v439_v22  ;;  %v474_v31 = vpack.c.bf16 %v454_v25, %v453_v24 }
  0xa7   : > { %v451_v30 = vld [vmem:[%s2485_s18 + $0xa0] sm:$0xff]  ;;  %v452_v33 = vld [vmem:[%s2485_s18 + $0xa8] sm:$0xff]  ;;  %671 = vmatprep.mubr.bf16.mxu0 %v1866_v28  ;;  %v466_v34 = vpack.c.bf16 %v438_v27, %v437_v26  ;;  %v449_v38 = vld [vmem:[%s2485_s18 + $0x90] sm:$0xff] }
  0xa8   : > { %1426 = vmatpush3.bf16.msra.mxu0 %v469_v14  ;;  %1672 = vmatpush3.bf16.msra.mxu1 %v469_v14  ;;  %v1869_v32 = vld [vmem:[%s2477_s27 + $0x84] ss:$8 sps:$4 sm:$0xff]   ;;  %v473_v36 = vpack.c.bf16 %v452_v33, %v451_v30  ;;  %v450_v39 = vld [vmem:[%s2485_s18 + $0x98] sm:$0xff]  ;;  %v433_v41 = vld [vmem:[%s2485_s18 + $0x10] sm:$0xff] }
  0xa9   : > { %1427 = vmatprep.subr.bf16.mxu0 %v476_v15  ;;  %1665 = vmatprep.subr.bf16.mxu1 %v476_v15  ;;  %v435_v35 = vld [vmem:[%s2485_s18 + $0x20] sm:$0xff]  ;;  %v436_v37 = vld [vmem:[%s2485_s18 + $0x28] sm:$0xff]  ;;  %v434_v42 = vld [vmem:[%s2485_s18 + $0x18] sm:$0xff]  ;;  %v472_v43 = vpack.c.bf16 %v450_v39, %v449_v38 }
  0xaa   : > { %735 = vmatprep.mubr.bf16.mxu1 %v1869_v32  ;;  %v465_v40 = vpack.c.bf16 %v436_v37, %v435_v35  ;;  %v447_v44 = vld [vmem:[%s2485_s18 + $0x80] sm:$0xff]  ;;  %v448_v45 = vld [vmem:[%s2485_s18 + $0x88] sm:$0xff]  ;;  %v464_v46 = vpack.c.bf16 %v434_v42, %v433_v41  ;;  %v1870_v53 = vld [vmem:[%s2477_s27 + $0x14] ss:$8 sps:$4 sm:$0xff]  }
  0xab   : > { %v431_v47 = vld [vmem:[%s2485_s18] sm:$0xff]  ;;  %v471_v48 = vpack.c.bf16 %v448_v45, %v447_v44  ;;  %v432_v49 = vld [vmem:[%s2485_s18 + $0x8] sm:$0xff]  ;;  %v1872_v54 = vld [vmem:[%s2477_s27 + $0x94] ss:$8 sps:$4 sm:$0xff]  }
  0xac   : > { %1428 = vmatpush3.bf16.msra.mxu0 %v468_v20  ;;  %1673 = vmatpush3.bf16.msra.mxu1 %v468_v20  ;;  %v463_v50 = vpack.c.bf16 %v432_v49, %v431_v47  ;;  %v1864_v51 = vld [vmem:[%s2477_s27] ss:$8 sps:$4 sm:$0xff]   ;;  %v1874_v55 = vld [vmem:[%s2477_s27 + $0x10] ss:$8 sps:$4 sm:$0xff]   ;;  %v1876_v57 = vld [vmem:[%s2477_s27 + $0x24] ss:$8 sps:$4 sm:$0xff]  }
  0xad   : > { %1429 = vmatprep.subr.bf16.mxu0 %v475_v21  ;;  %1666 = vmatprep.subr.bf16.mxu1 %v475_v21  ;;  %v1867_v52 = vld [vmem:[%s2477_s27 + $0x80] ss:$8 sps:$4 sm:$0xff]   ;;  %v1875_v56 = vld [vmem:[%s2477_s27 + $0x90] ss:$8 sps:$4 sm:$0xff]   ;;  %v1878_v58 = vld [vmem:[%s2477_s27 + $0xa4] ss:$8 sps:$4 sm:$0xff]  }
  0xae   : > { %v1880_v59 = vld [vmem:[%s2477_s27 + $0x20] ss:$8 sps:$4 sm:$0xff]   ;;  %v1882_v61 = vld [vmem:[%s2477_s27 + $0x34] ss:$8 sps:$4 sm:$0xff]   ;;  %v1886_v63 = vld [vmem:[%s2477_s27 + $0x30] ss:$8 sps:$4 sm:$0xff]  }
  0xaf   : > { %v1881_v60 = vld [vmem:[%s2477_s27 + $0xa0] ss:$8 sps:$4 sm:$0xff]   ;;  %v1884_v62 = vld [vmem:[%s2477_s27 + $0xb4] ss:$8 sps:$4 sm:$0xff]   ;;  %v1887_v0 = vld [vmem:[%s2477_s27 + $0xb0] ss:$8 sps:$4 sm:$0xff]  }
  0xb0   : > { %1430 = vmatpush3.bf16.msra.mxu0 %v467_v29  ;;  %1674 = vmatpush3.bf16.msra.mxu1 %v467_v29  ;;  %v1888_v1 = vld [vmem:[%s2477_s27 + $0x44] ss:$8 sps:$4 sm:$0xff]   ;;  %v1892_v3 = vld [vmem:[%s2477_s27 + $0x40] ss:$8 sps:$4 sm:$0xff]   ;;  %v1894_v5 = vld [vmem:[%s2477_s27 + $0x54] ss:$8 sps:$4 sm:$0xff]  }
  0xb1   : > { %1431 = vmatprep.subr.bf16.mxu0 %v474_v31  ;;  %1667 = vmatprep.subr.bf16.mxu1 %v474_v31  ;;  %v1890_v2 = vld [vmem:[%s2477_s27 + $0xc4] ss:$8 sps:$4 sm:$0xff]   ;;  %v1893_v4 = vld [vmem:[%s2477_s27 + $0xc0] ss:$8 sps:$4 sm:$0xff]   ;;  %v1896_v6 = vld [vmem:[%s2477_s27 + $0xd4] ss:$8 sps:$4 sm:$0xff]  }
  0xb2   : > { %v1898_v7 = vld [vmem:[%s2477_s27 + $0x50] ss:$8 sps:$4 sm:$0xff]   ;;  %v1900_v9 = vld [vmem:[%s2477_s27 + $0x64] ss:$8 sps:$4 sm:$0xff]   ;;  %v1904_v11 = vld [vmem:[%s2477_s27 + $0x60] ss:$8 sps:$4 sm:$0xff]  }
  0xb3   : > { %v1899_v8 = vld [vmem:[%s2477_s27 + $0xd0] ss:$8 sps:$4 sm:$0xff]   ;;  %v1902_v10 = vld [vmem:[%s2477_s27 + $0xe4] ss:$8 sps:$4 sm:$0xff]   ;;  %v1905_v12 = vld [vmem:[%s2477_s27 + $0xe0] ss:$8 sps:$4 sm:$0xff]  }
  0xb4   : > { %1432 = vmatpush3.bf16.msra.mxu0 %v466_v34  ;;  %1675 = vmatpush3.bf16.msra.mxu1 %v466_v34  ;;  %v1906_v13 = vld [vmem:[%s2477_s27 + $0x74] ss:$8 sps:$4 sm:$0xff]   ;;  %v1910_v15 = vld [vmem:[%s2477_s27 + $0x70] ss:$8 sps:$4 sm:$0xff]   ;;  %v368_v29 = vld [vmem:[#allocation2] sm:$0xff] }
  0xb5   : > { %1433 = vmatprep.subr.bf16.mxu0 %v473_v36  ;;  %1668 = vmatprep.subr.bf16.mxu1 %v473_v36  ;;  %v1908_v14 = vld [vmem:[%s2477_s27 + $0xf4] ss:$8 sps:$4 sm:$0xff]   ;;  %v1911_v16 = vld [vmem:[%s2477_s27 + $0xf0] ss:$8 sps:$4 sm:$0xff]   ;;  %v385_v41 = vld [vmem:[#allocation2 + $0x40] sm:$0xff] }
  0xb6   : > { %v367_v19 = vld [vmem:[#allocation2 + $0xb0] sm:$0xff]  ;;  %v383_v21 = vld [vmem:[#allocation2 + $0x38] sm:$0xff] }
  0xb7   : > { %v384_v31 = vld [vmem:[#allocation2 + $0x58] sm:$0xff] }
  0xb8   : > { %1434 = vmatpush3.bf16.msra.mxu0 %v465_v40  ;;  %1676 = vmatpush3.bf16.msra.mxu1 %v465_v40  ;;  %v369_v39 = vld [vmem:[#allocation2 + $0xd8] sm:$0xff] }
  0xb9   : > { %1435 = vmatprep.subr.bf16.mxu0 %v472_v43  ;;  %1669 = vmatprep.subr.bf16.mxu1 %v472_v43  ;;  %v370_v49 = vld [vmem:[#allocation2 + $0x18] sm:$0xff] }
  0xbc   : > { %1436 = vmatpush3.bf16.msra.mxu0 %v464_v46  ;;  %1677 = vmatpush3.bf16.msra.mxu1 %v464_v46 }
  0xbd   : > { %1437 = vmatprep.subr.bf16.mxu0 %v471_v48  ;;  %1670 = vmatprep.subr.bf16.mxu1 %v471_v48 }
  0xc0   : > { %1438 = vmatpush3.bf16.msra.mxu0 %v463_v50  ;;  %1678 = vmatpush3.bf16.msra.mxu1 %v463_v50 }
  0xc3   : > { %672 = vmatmul.mubr.bf16.vlgmr.msra.gmra.mxu0 %v1864_v51  ;;  %736 = vmatmul.mubr.bf16.vlgmr.msra.gmra.mxu1 %v1867_v52  ;;  %v386_v51 = vld [vmem:[#allocation2 + $0xc8] sm:$0xff] }
  0xc4   : > { %679 = vmatprep.mubr.bf16.mxu0 %v1870_v53  ;;  %743 = vmatprep.mubr.bf16.mxu1 %v1872_v54 }
  0xcb   : > { %680 = vmatmul.mubr.bf16.gmra.mxu0 %v1874_v55  ;;  %744 = vmatmul.mubr.bf16.gmra.mxu1 %v1875_v56 }
  0xcc   : > { %687 = vmatprep.mubr.bf16.mxu0 %v1876_v57  ;;  %751 = vmatprep.mubr.bf16.mxu1 %v1878_v58 }
  0xd3   : > { %688 = vmatmul.mubr.bf16.gmra.mxu0 %v1880_v59  ;;  %752 = vmatmul.mubr.bf16.gmra.mxu1 %v1881_v60  ;;  %v371_v59 = vld [vmem:[#allocation2 + $0x50] sm:$0xff] }
  0xd4   : > { %695 = vmatprep.mubr.bf16.mxu0 %v1882_v61  ;;  %759 = vmatprep.mubr.bf16.mxu1 %v1884_v62  ;;  %v387_v61 = vld [vmem:[#allocation2 + $0xe0] sm:$0xff] }
  0xdb   : > { %696 = vmatmul.mubr.bf16.gmra.mxu0 %v1886_v63  ;;  %760 = vmatmul.mubr.bf16.gmra.mxu1 %v1887_v0 }
  0xdc   : > { %703 = vmatprep.mubr.bf16.mxu0 %v1888_v1  ;;  %767 = vmatprep.mubr.bf16.mxu1 %v1890_v2 }
  0xe3   : > { %704 = vmatmul.mubr.bf16.gmra.mxu0 %v1892_v3  ;;  %768 = vmatmul.mubr.bf16.gmra.mxu1 %v1893_v4 }
  0xe4   : > { %711 = vmatprep.mubr.bf16.mxu0 %v1894_v5  ;;  %775 = vmatprep.mubr.bf16.mxu1 %v1896_v6  ;;  %v372_v5 = vld [vmem:[#allocation2 + $0x68] sm:$0xff] }
  0xeb   : > { %712 = vmatmul.mubr.bf16.gmra.mxu0 %v1898_v7  ;;  %776 = vmatmul.mubr.bf16.gmra.mxu1 %v1899_v8  ;;  %v388_v7 = vld [vmem:[#allocation2 + $0x90] sm:$0xff] }
  0xec   : > { %719 = vmatprep.mubr.bf16.mxu0 %v1900_v9  ;;  %783 = vmatprep.mubr.bf16.mxu1 %v1902_v10 }
  0xf3   : > { %720 = vmatmul.mubr.bf16.gmra.mxu0 %v1904_v11  ;;  %784 = vmatmul.mubr.bf16.gmra.mxu1 %v1905_v12 }
  0xf4   : > { %727 = vmatprep.mubr.bf16.mxu0 %v1906_v13  ;;  %791 = vmatprep.mubr.bf16.mxu1 %v1908_v14 }
  0xfb   : > { %728 = vmatmul.mubr.bf16.gmra.mxu0 %v1910_v15  ;;  %792 = vmatmul.mubr.bf16.gmra.mxu1 %v1911_v16  ;;  %v373_v15 = vld [vmem:[#allocation2 + $0x30] sm:$0xff] }
 0x183   : > { %v1439_v17 = vpop.f32.mrf.mxu0  ;;  %v1487_v18 = vpop.f32.mrf.mxu1 }
 0x185   : > { %v1440_v20 = vpop.f32.mrf.mxu0  ;;  %v1488_v22 = vpop.f32.mrf.mxu1 }
 0x186   : > { %v1441_v23 = vadd.f32 %v1440_v20, %v1439_v17  ;;  %v1489_v24 = vadd.f32 %v1488_v22, %v1487_v18  ;;  %v389_v17 = vld [vmem:[#allocation2 + $0x70] sm:$0xff] }
 0x187   : > { %v1442_v25 = vpop.f32.mrf.mxu0  ;;  %v1490_v26 = vpop.f32.mrf.mxu1 }
 0x188   : > { %v800_v27 = vadd.f32 %v1441_v23, %v367_v19  ;;  %v816_v28 = vadd.f32 %v1489_v24, %v383_v21 }
 0x189   : > { %v1443_v30 = vpop.f32.mrf.mxu0  ;;  %v1491_v32 = vpop.f32.mrf.mxu1 }
 0x18a   : > { %832 = vst [vmem:[#allocation2 + $0xb0] sm:$0xff] %v800_v27  ;;  %848 = vst [vmem:[#allocation2 + $0x38] sm:$0xff] %v816_v28  ;;  %v1444_v33 = vadd.f32 %v1443_v30, %v1442_v25  ;;  %v1492_v34 = vadd.f32 %v1491_v32, %v1490_v26  ;;  %v374_v25 = vld [vmem:[#allocation2 + $0x48] sm:$0xff]  ;;  %v390_v27 = vld [vmem:[#allocation2 + $0xc0] sm:$0xff] }
 0x18b   : > { %v1445_v35 = vpop.f32.mrf.mxu0  ;;  %v1493_v36 = vpop.f32.mrf.mxu1 }
 0x18c   : > { %v801_v37 = vadd.f32 %v1444_v33, %v368_v29  ;;  %v817_v38 = vadd.f32 %v1492_v34, %v384_v31 }
 0x18d   : > { %v1446_v40 = vpop.f32.mrf.mxu0  ;;  %v1494_v42 = vpop.f32.mrf.mxu1 }
 0x18e   : > { %833 = vst [vmem:[#allocation2] sm:$0xff] %v801_v37  ;;  %849 = vst [vmem:[#allocation2 + $0x58] sm:$0xff] %v817_v38  ;;  %v1447_v43 = vadd.f32 %v1446_v40, %v1445_v35  ;;  %v1495_v44 = vadd.f32 %v1494_v42, %v1493_v36  ;;  %v375_v35 = vld [vmem:[#allocation2 + $0x80] sm:$0xff]  ;;  %v391_v37 = vld [vmem:[#allocation2 + $0xa8] sm:$0xff] }
 0x18f   : > { %v1448_v45 = vpop.f32.mrf.mxu0  ;;  %v1496_v46 = vpop.f32.mrf.mxu1 }
 0x190   : > { %v802_v47 = vadd.f32 %v1447_v43, %v369_v39  ;;  %v818_v48 = vadd.f32 %v1495_v44, %v385_v41 }
 0x191   : > { %v1449_v50 = vpop.f32.mrf.mxu0  ;;  %v1497_v52 = vpop.f32.mrf.mxu1 }
 0x192   : > { %834 = vst [vmem:[#allocation2 + $0xd8] sm:$0xff] %v802_v47  ;;  %850 = vst [vmem:[#allocation2 + $0x40] sm:$0xff] %v818_v48  ;;  %v1450_v53 = vadd.f32 %v1449_v50, %v1448_v45  ;;  %v1498_v54 = vadd.f32 %v1497_v52, %v1496_v46  ;;  %v376_v45 = vld [vmem:[#allocation2 + $0x88] sm:$0xff]  ;;  %v392_v47 = vld [vmem:[#allocation2 + $0xd0] sm:$0xff] }
 0x193   : > { %v1451_v55 = vpop.f32.mrf.mxu0  ;;  %v1499_v56 = vpop.f32.mrf.mxu1 }
 0x194   : > { %v803_v57 = vadd.f32 %v1450_v53, %v370_v49  ;;  %v819_v58 = vadd.f32 %v1498_v54, %v386_v51 }
 0x195   : > { %v1452_v60 = vpop.f32.mrf.mxu0  ;;  %v1500_v62 = vpop.f32.mrf.mxu1 }
 0x196   : > { %835 = vst [vmem:[#allocation2 + $0x18] sm:$0xff] %v803_v57  ;;  %851 = vst [vmem:[#allocation2 + $0xc8] sm:$0xff] %v819_v58  ;;  %v1453_v63 = vadd.f32 %v1452_v60, %v1451_v55  ;;  %v1501_v0 = vadd.f32 %v1500_v62, %v1499_v56  ;;  %v377_v55 = vld [vmem:[#allocation2 + $0xe8] sm:$0xff]  ;;  %v393_v57 = vld [vmem:[#allocation2 + $0x10] sm:$0xff] }
 0x197   : > { %v1454_v1 = vpop.f32.mrf.mxu0  ;;  %v1502_v2 = vpop.f32.mrf.mxu1 }
 0x198   : > { %v804_v3 = vadd.f32 %v1453_v63, %v371_v59  ;;  %v820_v4 = vadd.f32 %v1501_v0, %v387_v61 }
 0x199   : > { %v1455_v6 = vpop.f32.mrf.mxu0  ;;  %v1503_v8 = vpop.f32.mrf.mxu1 }
 0x19a   : > { %836 = vst [vmem:[#allocation2 + $0x50] sm:$0xff] %v804_v3  ;;  %852 = vst [vmem:[#allocation2 + $0xe0] sm:$0xff] %v820_v4  ;;  %v1456_v9 = vadd.f32 %v1455_v6, %v1454_v1  ;;  %v1504_v10 = vadd.f32 %v1503_v8, %v1502_v2  ;;  %v378_v1 = vld [vmem:[#allocation2 + $0xb8] sm:$0xff]  ;;  %v394_v3 = vld [vmem:[#allocation2 + $0x28] sm:$0xff] }
 0x19b   : > { %v1457_v11 = vpop.f32.mrf.mxu0  ;;  %v1505_v12 = vpop.f32.mrf.mxu1 }
 0x19c   : > { %v805_v13 = vadd.f32 %v1456_v9, %v372_v5  ;;  %v821_v14 = vadd.f32 %v1504_v10, %v388_v7 }
 0x19d   : > { %v1458_v16 = vpop.f32.mrf.mxu0  ;;  %v1506_v18 = vpop.f32.mrf.mxu1 }
 0x19e   : > { %837 = vst [vmem:[#allocation2 + $0x68] sm:$0xff] %v805_v13  ;;  %853 = vst [vmem:[#allocation2 + $0x90] sm:$0xff] %v821_v14  ;;  %v1459_v19 = vadd.f32 %v1458_v16, %v1457_v11  ;;  %v1507_v20 = vadd.f32 %v1506_v18, %v1505_v12  ;;  %v379_v11 = vld [vmem:[#allocation2 + $0x60] sm:$0xff] }
 0x19f   : > { %v1460_v21 = vpop.f32.mrf.mxu0  ;;  %v1508_v22 = vpop.f32.mrf.mxu1  ;;  %v395_v13 = vld [vmem:[#allocation2 + $0xa0] sm:$0xff] }
 0x1a0   : > { %v806_v23 = vadd.f32 %v1459_v19, %v373_v15  ;;  %v822_v24 = vadd.f32 %v1507_v20, %v389_v17 }
 0x1a1   : > { %v1461_v26 = vpop.f32.mrf.mxu0  ;;  %v1509_v28 = vpop.f32.mrf.mxu1 }
 0x1a2   : > { %838 = vst [vmem:[#allocation2 + $0x30] sm:$0xff] %v806_v23  ;;  %854 = vst [vmem:[#allocation2 + $0x70] sm:$0xff] %v822_v24  ;;  %v1462_v29 = vadd.f32 %v1461_v26, %v1460_v21  ;;  %v1510_v30 = vadd.f32 %v1509_v28, %v1508_v22  ;;  %v380_v21 = vld [vmem:[#allocation2 + $0xf0] sm:$0xff]  ;;  %v396_v23 = vld [vmem:[#allocation2 + $0xf8] sm:$0xff] }
 0x1a3   : > { %v1463_v31 = vpop.f32.mrf.mxu0  ;;  %v1511_v32 = vpop.f32.mrf.mxu1 }
 0x1a4   : > { %v807_v33 = vadd.f32 %v1462_v29, %v374_v25  ;;  %v823_v34 = vadd.f32 %v1510_v30, %v390_v27 }
 0x1a5   : > { %v1464_v36 = vpop.f32.mrf.mxu0  ;;  %v1512_v38 = vpop.f32.mrf.mxu1 }
 0x1a6   : > { %839 = vst [vmem:[#allocation2 + $0x48] sm:$0xff] %v807_v33  ;;  %855 = vst [vmem:[#allocation2 + $0xc0] sm:$0xff] %v823_v34  ;;  %v1465_v39 = vadd.f32 %v1464_v36, %v1463_v31  ;;  %v1513_v40 = vadd.f32 %v1512_v38, %v1511_v32  ;;  %v381_v31 = vld [vmem:[#allocation2 + $0x8] sm:$0xff]  ;;  %v397_v33 = vld [vmem:[#allocation2 + $0x20] sm:$0xff] }
 0x1a7   : > { %v1466_v41 = vpop.f32.mrf.mxu0  ;;  %v1514_v42 = vpop.f32.mrf.mxu1 }
 0x1a8   : > { %v808_v43 = vadd.f32 %v1465_v39, %v375_v35  ;;  %v824_v44 = vadd.f32 %v1513_v40, %v391_v37 }
 0x1a9   : > { %v1467_v46 = vpop.f32.mrf.mxu0  ;;  %v1515_v48 = vpop.f32.mrf.mxu1 }
 0x1aa   : > { %840 = vst [vmem:[#allocation2 + $0x80] sm:$0xff] %v808_v43  ;;  %856 = vst [vmem:[#allocation2 + $0xa8] sm:$0xff] %v824_v44  ;;  %v1468_v49 = vadd.f32 %v1467_v46, %v1466_v41  ;;  %v1516_v50 = vadd.f32 %v1515_v48, %v1514_v42  ;;  %v382_v41 = vld [vmem:[#allocation2 + $0x78] sm:$0xff] }
 0x1ab   : > { %v1469_v51 = vpop.f32.mrf.mxu0  ;;  %v1517_v52 = vpop.f32.mrf.mxu1  ;;  %v398_v43 = vld [vmem:[#allocation2 + $0x98] sm:$0xff] }
 0x1ac   : > { %v809_v53 = vadd.f32 %v1468_v49, %v376_v45  ;;  %v825_v54 = vadd.f32 %v1516_v50, %v392_v47 }
 0x1ad   : > { %v1470_v56 = vpop.f32.mrf.mxu0  ;;  %v1518_v58 = vpop.f32.mrf.mxu1 }
 0x1ae   : > { %841 = vst [vmem:[#allocation2 + $0x88] sm:$0xff] %v809_v53  ;;  %857 = vst [vmem:[#allocation2 + $0xd0] sm:$0xff] %v825_v54  ;;  %v1471_v59 = vadd.f32 %v1470_v56, %v1469_v51  ;;  %v1519_v60 = vadd.f32 %v1518_v58, %v1517_v52 }
 0x1af   : > { %v1472_v61 = vpop.f32.mrf.mxu0  ;;  %v1520_v62 = vpop.f32.mrf.mxu1 }
 0x1b0   : > { %v810_v63 = vadd.f32 %v1471_v59, %v377_v55  ;;  %v826_v0 = vadd.f32 %v1519_v60, %v393_v57 }
 0x1b1   : > { %v1473_v2 = vpop.f32.mrf.mxu0  ;;  %v1521_v4 = vpop.f32.mrf.mxu1 }
 0x1b2   : > { %842 = vst [vmem:[#allocation2 + $0xe8] sm:$0xff] %v810_v63  ;;  %858 = vst [vmem:[#allocation2 + $0x10] sm:$0xff] %v826_v0  ;;  %v1474_v5 = vadd.f32 %v1473_v2, %v1472_v61  ;;  %v1522_v6 = vadd.f32 %v1521_v4, %v1520_v62 }
 0x1b3   : > { %v1475_v7 = vpop.f32.mrf.mxu0  ;;  %v1523_v8 = vpop.f32.mrf.mxu1 }
 0x1b4   : > { %v811_v9 = vadd.f32 %v1474_v5, %v378_v1  ;;  %v827_v10 = vadd.f32 %v1522_v6, %v394_v3 }
 0x1b5   : > { %v1476_v12 = vpop.f32.mrf.mxu0  ;;  %v1524_v14 = vpop.f32.mrf.mxu1 }
 0x1b6   : > { %843 = vst [vmem:[#allocation2 + $0xb8] sm:$0xff] %v811_v9  ;;  %859 = vst [vmem:[#allocation2 + $0x28] sm:$0xff] %v827_v10  ;;  %v1477_v15 = vadd.f32 %v1476_v12, %v1475_v7  ;;  %v1525_v16 = vadd.f32 %v1524_v14, %v1523_v8 }
 0x1b7   : > { %v1478_v17 = vpop.f32.mrf.mxu0  ;;  %v1526_v18 = vpop.f32.mrf.mxu1 }
 0x1b8   : > { %v812_v19 = vadd.f32 %v1477_v15, %v379_v11  ;;  %v828_v20 = vadd.f32 %v1525_v16, %v395_v13 }
 0x1b9   : > { %v1479_v22 = vpop.f32.mrf.mxu0  ;;  %v1527_v24 = vpop.f32.mrf.mxu1 }
 0x1ba   : > { %844 = vst [vmem:[#allocation2 + $0x60] sm:$0xff] %v812_v19  ;;  %860 = vst [vmem:[#allocation2 + $0xa0] sm:$0xff] %v828_v20  ;;  %v1480_v25 = vadd.f32 %v1479_v22, %v1478_v17  ;;  %v1528_v26 = vadd.f32 %v1527_v24, %v1526_v18 }
 0x1bb   : > { %v1481_v27 = vpop.f32.mrf.mxu0  ;;  %v1529_v28 = vpop.f32.mrf.mxu1 }
 0x1bc   : > { %v813_v29 = vadd.f32 %v1480_v25, %v380_v21  ;;  %v829_v30 = vadd.f32 %v1528_v26, %v396_v23 }
 0x1bd   : > { %v1482_v32 = vpop.f32.mrf.mxu0  ;;  %v1530_v34 = vpop.f32.mrf.mxu1 }
 0x1be   : > { %845 = vst [vmem:[#allocation2 + $0xf0] sm:$0xff] %v813_v29  ;;  %861 = vst [vmem:[#allocation2 + $0xf8] sm:$0xff] %v829_v30  ;;  %v1483_v35 = vadd.f32 %v1482_v32, %v1481_v27  ;;  %v1531_v36 = vadd.f32 %v1530_v34, %v1529_v28 }
 0x1bf   : > { %v1484_v37 = vpop.f32.mrf.mxu0  ;;  %v1532_v38 = vpop.f32.mrf.mxu1 }
 0x1c0   : > { %v814_v39 = vadd.f32 %v1483_v35, %v381_v31  ;;  %v830_v40 = vadd.f32 %v1531_v36, %v397_v33 }
 0x1c1   : > { %v1485_v42 = vpop.f32.mrf.mxu0  ;;  %v1533_v44 = vpop.f32.mrf.mxu1 }
 0x1c2   : > { %846 = vst [vmem:[#allocation2 + $0x8] sm:$0xff] %v814_v39  ;;  %862 = vst [vmem:[#allocation2 + $0x20] sm:$0xff] %v830_v40  ;;  %v1486_v45 = vadd.f32 %v1485_v42, %v1484_v37  ;;  %v1534_v46 = vadd.f32 %v1533_v44, %v1532_v38  ;;  %867 = sbr.rel (%p1413_p11) target bundleno = 715 (0x2cb), region = 60 }
 0x1c4   : > { %v815_v47 = vadd.f32 %v1486_v45, %v382_v41  ;;  %v831_v48 = vadd.f32 %v1534_v46, %v398_v43 }
 0x1c6   : > { %847 = vst [vmem:[#allocation2 + $0x78] sm:$0xff] %v815_v47  ;;  %863 = vst [vmem:[#allocation2 + $0x98] sm:$0xff] %v831_v48 }
 0x1c7   : > { %v915_v49 = vld [vmem:[#allocation9 + $0x78] sm:$0xff]  ;;  %v914_v50 = vld [vmem:[#allocation9 + $0x70] sm:$0xff]  ;;  %v913_v51 = vld [vmem:[#allocation9 + $0x68] sm:$0xff] }
 0x1c8   : > { %1583 = vmatprep.subr.mxu0 %v915_v49  ;;  %1679 = vmatprep.subr.mxu1 %v915_v49  ;;  %v912_v52 = vld [vmem:[#allocation9 + $0x60] sm:$0xff]  ;;  %v911_v53 = vld [vmem:[#allocation9 + $0x58] sm:$0xff]  ;;  %v910_v54 = vld [vmem:[#allocation9 + $0x50] sm:$0xff] }
 0x1c9   : > { %1584 = vmatpush3.msra.mxu0 %v915_v49  ;;  %1695 = vmatpush3.msra.mxu1 %v915_v49  ;;  %v909_v55 = vld [vmem:[#allocation9 + $0x48] sm:$0xff]  ;;  %v908_v56 = vld [vmem:[#allocation9 + $0x40] sm:$0xff]  ;;  %v907_v57 = vld [vmem:[#allocation9 + $0x38] sm:$0xff] }
 0x1ca   : > { %1585 = vmatprep.subr.mxu0 %v914_v50  ;;  %1680 = vmatprep.subr.mxu1 %v914_v50  ;;  %v906_v58 = vld [vmem:[#allocation9 + $0x30] sm:$0xff]  ;;  %v905_v59 = vld [vmem:[#allocation9 + $0x28] sm:$0xff]  ;;  %v904_v60 = vld [vmem:[#allocation9 + $0x20] sm:$0xff] }
 0x1cb   : > { %1586 = vmatpush3.msra.mxu0 %v914_v50  ;;  %1696 = vmatpush3.msra.mxu1 %v914_v50  ;;  %v903_v61 = vld [vmem:[#allocation9 + $0x18] sm:$0xff]  ;;  %v902_v62 = vld [vmem:[#allocation9 + $0x10] sm:$0xff]  ;;  %v901_v63 = vld [vmem:[#allocation9 + $0x8] sm:$0xff] }
 0x1cc   : > { %1587 = vmatprep.subr.mxu0 %v913_v51  ;;  %1681 = vmatprep.subr.mxu1 %v913_v51  ;;  %v900_v0 = vld [vmem:[#allocation9] sm:$0xff]  ;;  %v868_v1 = vld [vmem:[#allocation2 + $0xb0] sm:$0xff]  ;;  %v884_v2 = vld [vmem:[#allocation2 + $0x38] sm:$0xff] }
 0x1cd   : > { %1588 = vmatpush3.msra.mxu0 %v913_v51  ;;  %1697 = vmatpush3.msra.mxu1 %v913_v51  ;;  %v869_v3 = vld [vmem:[#allocation2] sm:$0xff]  ;;  %v885_v4 = vld [vmem:[#allocation2 + $0x58] sm:$0xff]  ;;  %v887_v8 = vld [vmem:[#allocation2 + $0xc8] sm:$0xff] }
 0x1ce   : > { %1589 = vmatprep.subr.mxu0 %v912_v52  ;;  %1682 = vmatprep.subr.mxu1 %v912_v52  ;;  %v870_v5 = vld [vmem:[#allocation2 + $0xd8] sm:$0xff]  ;;  %v886_v6 = vld [vmem:[#allocation2 + $0x40] sm:$0xff]  ;;  %v872_v9 = vld [vmem:[#allocation2 + $0x50] sm:$0xff] }
 0x1cf   : > { %1590 = vmatpush3.msra.mxu0 %v912_v52  ;;  %1698 = vmatpush3.msra.mxu1 %v912_v52  ;;  %v871_v7 = vld [vmem:[#allocation2 + $0x18] sm:$0xff]  ;;  %v888_v10 = vld [vmem:[#allocation2 + $0xe0] sm:$0xff]  ;;  %v873_v11 = vld [vmem:[#allocation2 + $0x68] sm:$0xff] }
 0x1d0   : > { %1591 = vmatprep.subr.mxu0 %v911_v53  ;;  %1683 = vmatprep.subr.mxu1 %v911_v53  ;;  %v889_v12 = vld [vmem:[#allocation2 + $0x90] sm:$0xff]  ;;  %v875_v15 = vld [vmem:[#allocation2 + $0x48] sm:$0xff]  ;;  %v891_v16 = vld [vmem:[#allocation2 + $0xc0] sm:$0xff] }
 0x1d1   : > { %1592 = vmatpush3.msra.mxu0 %v911_v53  ;;  %1699 = vmatpush3.msra.mxu1 %v911_v53  ;;  %v874_v13 = vld [vmem:[#allocation2 + $0x30] sm:$0xff]  ;;  %v876_v17 = vld [vmem:[#allocation2 + $0x80] sm:$0xff]  ;;  %v892_v18 = vld [vmem:[#allocation2 + $0xa8] sm:$0xff] }
 0x1d2   : > { %1593 = vmatprep.subr.mxu0 %v910_v54  ;;  %1684 = vmatprep.subr.mxu1 %v910_v54  ;;  %v890_v14 = vld [vmem:[#allocation2 + $0x70] sm:$0xff]  ;;  %v877_v19 = vld [vmem:[#allocation2 + $0x88] sm:$0xff]  ;;  %v879_v23 = vld [vmem:[#allocation2 + $0xb8] sm:$0xff] }
 0x1d3   : > { %1594 = vmatpush3.msra.mxu0 %v910_v54  ;;  %1700 = vmatpush3.msra.mxu1 %v910_v54  ;;  %v893_v20 = vld [vmem:[#allocation2 + $0xd0] sm:$0xff]  ;;  %v878_v21 = vld [vmem:[#allocation2 + $0xe8] sm:$0xff]  ;;  %v880_v25 = vld [vmem:[#allocation2 + $0x60] sm:$0xff] }
 0x1d4   : > { %1595 = vmatprep.subr.mxu0 %v909_v55  ;;  %1685 = vmatprep.subr.mxu1 %v909_v55  ;;  %v894_v22 = vld [vmem:[#allocation2 + $0x10] sm:$0xff]  ;;  %v895_v24 = vld [vmem:[#allocation2 + $0x28] sm:$0xff]  ;;  %v896_v26 = vld [vmem:[#allocation2 + $0xa0] sm:$0xff] }
 0x1d5   : > { %1596 = vmatpush3.msra.mxu0 %v909_v55  ;;  %1701 = vmatpush3.msra.mxu1 %v909_v55  ;;  %v881_v27 = vld [vmem:[#allocation2 + $0xf0] sm:$0xff]  ;;  %v897_v28 = vld [vmem:[#allocation2 + $0xf8] sm:$0xff]  ;;  %v882_v29 = vld [vmem:[#allocation2 + $0x8] sm:$0xff] }
 0x1d6   : > { %1597 = vmatprep.subr.mxu0 %v908_v56  ;;  %1686 = vmatprep.subr.mxu1 %v908_v56  ;;  %v898_v30 = vld [vmem:[#allocation2 + $0x20] sm:$0xff]  ;;  %v883_v31 = vld [vmem:[#allocation2 + $0x78] sm:$0xff] }
 0x1d7   : > { %1598 = vmatpush3.msra.mxu0 %v908_v56  ;;  %1702 = vmatpush3.msra.mxu1 %v908_v56  ;;  %v899_v32 = vld [vmem:[#allocation2 + $0x98] sm:$0xff] }
 0x1d8   : > { %1599 = vmatprep.subr.mxu0 %v907_v57  ;;  %1687 = vmatprep.subr.mxu1 %v907_v57 }
 0x1d9   : > { %1600 = vmatpush3.msra.mxu0 %v907_v57  ;;  %1703 = vmatpush3.msra.mxu1 %v907_v57 }
 0x1da   : > { %1601 = vmatprep.subr.mxu0 %v906_v58  ;;  %1688 = vmatprep.subr.mxu1 %v906_v58 }
 0x1db   : > { %1602 = vmatpush3.msra.mxu0 %v906_v58  ;;  %1704 = vmatpush3.msra.mxu1 %v906_v58 }
 0x1dc   : > { %1603 = vmatprep.subr.mxu0 %v905_v59  ;;  %1689 = vmatprep.subr.mxu1 %v905_v59 }
 0x1dd   : > { %1604 = vmatpush3.msra.mxu0 %v905_v59  ;;  %1705 = vmatpush3.msra.mxu1 %v905_v59 }
 0x1de   : > { %1605 = vmatprep.subr.mxu0 %v904_v60  ;;  %1690 = vmatprep.subr.mxu1 %v904_v60 }
 0x1df   : > { %1606 = vmatpush3.msra.mxu0 %v904_v60  ;;  %1706 = vmatpush3.msra.mxu1 %v904_v60 }
 0x1e0   : > { %1607 = vmatprep.subr.mxu0 %v903_v61  ;;  %1691 = vmatprep.subr.mxu1 %v903_v61 }
 0x1e1   : > { %1608 = vmatpush3.msra.mxu0 %v903_v61  ;;  %1707 = vmatpush3.msra.mxu1 %v903_v61 }
 0x1e2   : > { %1609 = vmatprep.subr.mxu0 %v902_v62  ;;  %1692 = vmatprep.subr.mxu1 %v902_v62 }
 0x1e3   : > { %1610 = vmatpush3.msra.mxu0 %v902_v62  ;;  %1708 = vmatpush3.msra.mxu1 %v902_v62 }
 0x1e4   : > { %1611 = vmatprep.subr.mxu0 %v901_v63  ;;  %1693 = vmatprep.subr.mxu1 %v901_v63 }
 0x1e5   : > { %1612 = vmatpush3.msra.mxu0 %v901_v63  ;;  %1709 = vmatpush3.msra.mxu1 %v901_v63 }
 0x1e6   : > { %1613 = vmatprep.subr.mxu0 %v900_v0  ;;  %1694 = vmatprep.subr.mxu1 %v900_v0 }
 0x1e7   : > { %1614 = vmatpush3.msra.mxu0 %v900_v0  ;;  %1710 = vmatpush3.msra.mxu1 %v900_v0 }
 0x1e8   : > { %1615 = vmatprep.mubr.f32.mxu0 %v868_v1  ;;  %1639 = vmatprep.mubr.f32.mxu1 %v884_v2 }
 0x1e9   : > { %1616 = vmatmul.mubr.f32.vlgmr.msra.gmra.mxu0 %v869_v3  ;;  %1640 = vmatmul.mubr.f32.vlgmr.msra.gmra.mxu1 %v885_v4 }
 0x1ea   : > { %1618 = vmatprep.mubr.f32.mxu0 %v870_v5  ;;  %1642 = vmatprep.mubr.f32.mxu1 %v886_v6 }
 0x1ed   : > { %1619 = vmatmul.mubr.f32.gmra.mxu0 %v871_v7  ;;  %1643 = vmatmul.mubr.f32.gmra.mxu1 %v887_v8 }
 0x1ee   : > { %1621 = vmatprep.mubr.f32.mxu0 %v872_v9  ;;  %1645 = vmatprep.mubr.f32.mxu1 %v888_v10 }
 0x1f1   : > { %1622 = vmatmul.mubr.f32.gmra.mxu0 %v873_v11  ;;  %1646 = vmatmul.mubr.f32.gmra.mxu1 %v889_v12 }
 0x1f2   : > { %1624 = vmatprep.mubr.f32.mxu0 %v874_v13  ;;  %1648 = vmatprep.mubr.f32.mxu1 %v890_v14 }
 0x1f5   : > { %1625 = vmatmul.mubr.f32.gmra.mxu0 %v875_v15  ;;  %1649 = vmatmul.mubr.f32.gmra.mxu1 %v891_v16 }
 0x1f6   : > { %1627 = vmatprep.mubr.f32.mxu0 %v876_v17  ;;  %1651 = vmatprep.mubr.f32.mxu1 %v892_v18 }
 0x1f9   : > { %1628 = vmatmul.mubr.f32.gmra.mxu0 %v877_v19  ;;  %1652 = vmatmul.mubr.f32.gmra.mxu1 %v893_v20 }
 0x1fa   : > { %1630 = vmatprep.mubr.f32.mxu0 %v878_v21  ;;  %1654 = vmatprep.mubr.f32.mxu1 %v894_v22 }
 0x1fd   : > { %1631 = vmatmul.mubr.f32.gmra.mxu0 %v879_v23  ;;  %1655 = vmatmul.mubr.f32.gmra.mxu1 %v895_v24 }
 0x1fe   : > { %1633 = vmatprep.mubr.f32.mxu0 %v880_v25  ;;  %1657 = vmatprep.mubr.f32.mxu1 %v896_v26 }
 0x201   : > { %1634 = vmatmul.mubr.f32.gmra.mxu0 %v881_v27  ;;  %1658 = vmatmul.mubr.f32.gmra.mxu1 %v897_v28 }
 0x202   : > { %1636 = vmatprep.mubr.f32.mxu0 %v882_v29  ;;  %1660 = vmatprep.mubr.f32.mxu1 %v898_v30 }
 0x205   : > { %1637 = vmatmul.mubr.f32.gmra.mxu0 %v883_v31  ;;  %1661 = vmatmul.mubr.f32.gmra.mxu1 %v899_v32 }
 0x2a9   : > { %v1617_v33 = vpop.f32.mrf.mxu0  ;;  %v1641_v34 = vpop.f32.mrf.mxu1 }
 0x2aa   : > { %v1142_v35 = vmax.f32 %v1617_v33, 0.0  ;;  %v1158_v36 = vmax.f32 %v1641_v34, 0.0 }
 0x2ab   : > { %v982_v37 = vpop.f32.mrf.mxu0  ;;  %v1062_v38 = vpop.f32.mrf.mxu1 }
 0x2ac   : > { %1174 = vst [vmem:[%s2502_s3 + $0x8] sm:$0xff] %v1142_v35  ;;  %1190 = vst [vmem:[%s2502_s3 + $0x88] sm:$0xff] %v1158_v36  ;;  %v1141_v39 = vmax.f32 %v982_v37, 0.0  ;;  %v1157_v40 = vmax.f32 %v1062_v38, 0.0 }
 0x2ad   : > { %v1620_v41 = vpop.f32.mrf.mxu0  ;;  %v1644_v42 = vpop.f32.mrf.mxu1 }
 0x2ae   : > { %1173 = vst [vmem:[%s2502_s3] sm:$0xff] %v1141_v39  ;;  %1189 = vst [vmem:[%s2502_s3 + $0x80] sm:$0xff] %v1157_v40  ;;  %v1144_v43 = vmax.f32 %v1620_v41, 0.0  ;;  %v1160_v44 = vmax.f32 %v1644_v42, 0.0 }
 0x2af   : > { %v992_v45 = vpop.f32.mrf.mxu0  ;;  %v1072_v46 = vpop.f32.mrf.mxu1 }
 0x2b0   : > { %1176 = vst [vmem:[%s2502_s3 + $0x18] sm:$0xff] %v1144_v43  ;;  %1192 = vst [vmem:[%s2502_s3 + $0x98] sm:$0xff] %v1160_v44  ;;  %v1143_v47 = vmax.f32 %v992_v45, 0.0  ;;  %v1159_v48 = vmax.f32 %v1072_v46, 0.0 }
 0x2b1   : > { %v1623_v49 = vpop.f32.mrf.mxu0  ;;  %v1647_v50 = vpop.f32.mrf.mxu1 }
 0x2b2   : > { %1175 = vst [vmem:[%s2502_s3 + $0x10] sm:$0xff] %v1143_v47  ;;  %1191 = vst [vmem:[%s2502_s3 + $0x90] sm:$0xff] %v1159_v48  ;;  %v1146_v51 = vmax.f32 %v1623_v49, 0.0  ;;  %v1162_v52 = vmax.f32 %v1647_v50, 0.0 }
 0x2b3   : > { %v1002_v53 = vpop.f32.mrf.mxu0  ;;  %v1082_v54 = vpop.f32.mrf.mxu1 }
 0x2b4   : > { %1178 = vst [vmem:[%s2502_s3 + $0x28] sm:$0xff] %v1146_v51  ;;  %1194 = vst [vmem:[%s2502_s3 + $0xa8] sm:$0xff] %v1162_v52  ;;  %v1145_v55 = vmax.f32 %v1002_v53, 0.0  ;;  %v1161_v56 = vmax.f32 %v1082_v54, 0.0 }
 0x2b5   : > { %v1626_v57 = vpop.f32.mrf.mxu0  ;;  %v1650_v58 = vpop.f32.mrf.mxu1 }
 0x2b6   : > { %1177 = vst [vmem:[%s2502_s3 + $0x20] sm:$0xff] %v1145_v55  ;;  %1193 = vst [vmem:[%s2502_s3 + $0xa0] sm:$0xff] %v1161_v56  ;;  %v1148_v59 = vmax.f32 %v1626_v57, 0.0  ;;  %v1164_v60 = vmax.f32 %v1650_v58, 0.0 }
 0x2b7   : > { %v1012_v61 = vpop.f32.mrf.mxu0  ;;  %v1092_v62 = vpop.f32.mrf.mxu1 }
 0x2b8   : > { %1180 = vst [vmem:[%s2502_s3 + $0x38] sm:$0xff] %v1148_v59  ;;  %1196 = vst [vmem:[%s2502_s3 + $0xb8] sm:$0xff] %v1164_v60  ;;  %v1147_v63 = vmax.f32 %v1012_v61, 0.0  ;;  %v1163_v0 = vmax.f32 %v1092_v62, 0.0 }
 0x2b9   : > { %v1629_v1 = vpop.f32.mrf.mxu0  ;;  %v1653_v2 = vpop.f32.mrf.mxu1 }
 0x2ba   : > { %1179 = vst [vmem:[%s2502_s3 + $0x30] sm:$0xff] %v1147_v63  ;;  %1195 = vst [vmem:[%s2502_s3 + $0xb0] sm:$0xff] %v1163_v0  ;;  %v1150_v3 = vmax.f32 %v1629_v1, 0.0  ;;  %v1166_v4 = vmax.f32 %v1653_v2, 0.0 }
 0x2bb   : > { %v1022_v5 = vpop.f32.mrf.mxu0  ;;  %v1102_v6 = vpop.f32.mrf.mxu1 }
 0x2bc   : > { %1182 = vst [vmem:[%s2502_s3 + $0x48] sm:$0xff] %v1150_v3  ;;  %1198 = vst [vmem:[%s2502_s3 + $0xc8] sm:$0xff] %v1166_v4  ;;  %v1149_v7 = vmax.f32 %v1022_v5, 0.0  ;;  %v1165_v8 = vmax.f32 %v1102_v6, 0.0 }
 0x2bd   : > { %v1632_v9 = vpop.f32.mrf.mxu0  ;;  %v1656_v10 = vpop.f32.mrf.mxu1 }
 0x2be   : > { %1181 = vst [vmem:[%s2502_s3 + $0x40] sm:$0xff] %v1149_v7  ;;  %1197 = vst [vmem:[%s2502_s3 + $0xc0] sm:$0xff] %v1165_v8  ;;  %v1152_v11 = vmax.f32 %v1632_v9, 0.0  ;;  %v1168_v12 = vmax.f32 %v1656_v10, 0.0 }
 0x2bf   : > { %v1032_v13 = vpop.f32.mrf.mxu0  ;;  %v1112_v14 = vpop.f32.mrf.mxu1 }
 0x2c0   : > { %1184 = vst [vmem:[%s2502_s3 + $0x58] sm:$0xff] %v1152_v11  ;;  %1200 = vst [vmem:[%s2502_s3 + $0xd8] sm:$0xff] %v1168_v12  ;;  %v1151_v15 = vmax.f32 %v1032_v13, 0.0  ;;  %v1167_v16 = vmax.f32 %v1112_v14, 0.0 }
 0x2c1   : > { %v1635_v17 = vpop.f32.mrf.mxu0  ;;  %v1659_v18 = vpop.f32.mrf.mxu1 }
 0x2c2   : > { %1183 = vst [vmem:[%s2502_s3 + $0x50] sm:$0xff] %v1151_v15  ;;  %1199 = vst [vmem:[%s2502_s3 + $0xd0] sm:$0xff] %v1167_v16  ;;  %v1154_v19 = vmax.f32 %v1635_v17, 0.0  ;;  %v1170_v20 = vmax.f32 %v1659_v18, 0.0 }
 0x2c3   : > { %v1042_v21 = vpop.f32.mrf.mxu0  ;;  %v1122_v22 = vpop.f32.mrf.mxu1 }
 0x2c4   : > { %1186 = vst [vmem:[%s2502_s3 + $0x68] sm:$0xff] %v1154_v19  ;;  %1202 = vst [vmem:[%s2502_s3 + $0xe8] sm:$0xff] %v1170_v20  ;;  %v1153_v23 = vmax.f32 %v1042_v21, 0.0  ;;  %v1169_v24 = vmax.f32 %v1122_v22, 0.0 }
 0x2c5   : > { %v1638_v25 = vpop.f32.mrf.mxu0  ;;  %v1662_v26 = vpop.f32.mrf.mxu1 }
 0x2c6   : > { %1185 = vst [vmem:[%s2502_s3 + $0x60] sm:$0xff] %v1153_v23  ;;  %1201 = vst [vmem:[%s2502_s3 + $0xe0] sm:$0xff] %v1169_v24  ;;  %v1156_v27 = vmax.f32 %v1638_v25, 0.0  ;;  %v1172_v28 = vmax.f32 %v1662_v26, 0.0 }
 0x2c7   : > { %v1052_v29 = vpop.f32.mrf.mxu0  ;;  %v1132_v30 = vpop.f32.mrf.mxu1 }
 0x2c8   : > { %1188 = vst [vmem:[%s2502_s3 + $0x78] sm:$0xff] %v1156_v27  ;;  %1204 = vst [vmem:[%s2502_s3 + $0xf8] sm:$0xff] %v1172_v28  ;;  %v1155_v31 = vmax.f32 %v1052_v29, 0.0  ;;  %v1171_v32 = vmax.f32 %v1132_v30, 0.0 }
 0x2ca   : > { %1187 = vst [vmem:[%s2502_s3 + $0x70] sm:$0xff] %v1155_v31  ;;  %1203 = vst [vmem:[%s2502_s3 + $0xf0] sm:$0xff] %v1171_v32 }
 0x2cb PF: > { %s2749_s24 = sld [smem:[#allocation19_spill]]  ;;  %s1219_s23 = sshll.u32 %s2502_s3, 4  ;;  %s2609_s23 = int_to_ptr.vmem [resolvable:$true] %s1219_s23 }
 0x2cc   : > { %s2750_s29 = sld [smem:[#allocation29_spill]]  ;;  %s2613_s26 = scalar_lea.sflag [#allocation5], %s322_s25 }
 0x2cd   : > { %s2022_s21 = scalar_lea.vmem %s2609_s23, 4096  ;;  %p2751_p1 = scmp.ne.s32.totalorder %s2741_s13, 0 }
 0x2ce   : > { %p2023_p0 = scmp.ne.s32.totalorder %s2609_s23, %s2022_s21  ;;  %s2188_s11 = smov [#allocation11]  }
 0x2cf   : > { %s2026_s8 = sshll.u32 %s2188_s11, 4  ;;  %s2027_s8 = int_to_ptr.vmem [resolvable:$false] %s2026_s8 }
 0x2d0   : > { %p2024_p9 = pnand %p2023_p0, %p2751_p1  ;;  %s2028_s1 = scalar_lea.vmem %s2027_s8, 8192 }
 0x2d1   : > { %s1422_s12 = sshll.u32 %s2749_s24, 12  ;;  %p2029_p8 = scmp.lt.s32.totalorder %s2609_s23, %s2027_s8 }
 0x2d2   : > { %s2606_s4 = scalar_lea.hbm %s2750_s29, %s1422_s12  ;;  %p2025_p7 = pneg %p2024_p9 }
 0x2d3   : > { %p2030_p10 = scmp.lt.s32.totalorder %s2028_s1, %s2022_s21 }
 0x2d5   : > { %p2031_p5 = por %p2030_p10, %p2029_p8 }
 0x2d7   : > { %p2032_p6 = pnand %p2031_p5, %p2025_p7 }
 0x2d9   : > { %2035 = shalt.err (!%p2032_p6)
}
 0x2da   : > { %s2036_s27 = scalar_lea.hbm %s2606_s4, 4096  ;;  %s2040_s30 = scalar_lea.hbm %s2750_s29, 8192 }
 0x2db   : > { %p2037_p2 = scmp.ne.s32.totalorder %s2606_s4, %s2036_s27  ;;  %p2041_p13 = scmp.lt.s32.totalorder %s2606_s4, %s2750_s29 }
 0x2dc   : > { %p2042_p3 = scmp.lt.s32.totalorder %s2040_s30, %s2036_s27 }
 0x2dd   : > { %p2038_p12 = pnand %p2037_p2, %p2751_p1 }
 0x2de   : > { %p2043_p11 = por %p2042_p3, %p2041_p13 }
 0x2df   : > { %p2039_p4 = pneg %p2038_p12 }
 0x2e1   : > { %p2044_p0 = pnand %p2043_p11, %p2039_p4 }
 0x2e3   : > { %2047 = shalt.err (!%p2044_p0)
}
 0x2e4   : > { %s2189_s25 = smov 128   ;;  %s2190_s7 = smov 8  }
 0x2e5   : > { %1721 = dma.vmem_to_hbm [thread:$0]  (%p2751_p1), %s2609_s23, 4096, %s2606_s4, %s2613_s26, %s2189_s25, %s2189_s25, %s2190_s7  }
 0x2e6 PF: > { %p1744_p9 = scmp.ge.s32.totalorder %s2178_s28, 2  ;;  %s1234_s3 = sand.u32 1, %s2126_s15  }
 0x2e7   : > { %p2752_p7 = scmp.ne.s32.totalorder %s2743_s9, 0  ;;  %s1235_s24 = scalar_lea.sflag [#allocation5], %s1234_s3 }
 0x2e9   : > { %p1738_p8 = pnand %p1744_p9, %p2752_p7 }
 0x2eb   : > { %p1739_p10 = pneg %p1738_p8 }
 0x2ed   : > { %2121 = dma.done.wait (%p1739_p10), %s1235_s24, 4096  }
 0x2ee   : > { %2123 = vsyncadd (%p1739_p10), %s1235_s24, 4294963200  ;;  %s24_s28 = sadd.s32 1, %s2178_s28   ;;  %s2754_s13 = sld [smem:[#allocation17_spill]] }
 0x2ef   : > { %p2641_p5 = scmp.ge.s32.totalorder %s24_s28, 6   ;;  %s2755_s20 = sld [smem:[#allocation24_spill]] }
 0x2f0   : > { %s2756_s14 = sld [smem:[#allocation18_spill]]  ;;  %s2762_s15 = smov %s2130_s16 }
 0x2f1   : > { %s2757_s23 = sld [smem:[#allocation25_spill]]  ;;  %s2763_s16 = smov %s2134_s17 }
 0x2f2   : > { %s2758_s24 = sld [smem:[#allocation20_spill]]  ;;  %s2764_s17 = smov %s2427_s5 }
 0x2f3   : > { %s2759_s25 = sld [smem:[#allocation21_spill]]  ;;  %s2765_s18 = smov %s2142_s19 }
 0x2f4   : > { %s2760_s26 = sld [smem:[#allocation22_spill]]  ;;  %s2766_s19 = smov %s2754_s13 }
 0x2f5   : > { %s2761_s27 = sld [smem:[#allocation23_spill]]  ;;  %s2767_s21 = smov %s2154_s22 }
 0x2f6   : > { %s2768_s22 = smov %s2756_s14  ;;  %23 = sbr.rel (!%p2641_p5) target bundleno = 18 (0x12), region = 117 }
 0x2fb   :  { %1240 = vsyncpa [#allocation4], 1 }
 0x2fc   :  { %1242 = vsyncpa [#allocation4 + $0x1], 1 }
 0x2fd   :  { %1243 = vsyncpa [#allocation7], 1 }
 0x2fe   :  { %1245 = vsyncpa [#allocation7 + $0x1], 1 }
 0x2ff   :  { %1246 = vsyncpa [#allocation10], 1 }
 0x300   :  { %1247 = vsyncpa [#allocation5], 1 }
 0x301   :  { %1249 = vsyncpa [#allocation5 + $0x1], 1 }

</bundles_post_ra>
